<compile_context>
chip_gen: v5e
topology: v5e:2x2
jax: 0.10.0
libtpu: 0.0.40
codegen_flags: <defaults>
</compile_context>

<pallas_src>
import functools

import jax
import jax.numpy as jnp
import numpy as np
from jax import lax
from jax.experimental import pallas as pl
from jax.experimental.pallas import tpu as pltpu

_CONV_CH = 20  # conv1/conv2 channel count, fixed by the module


def _round_up(x, m):
    return ((x + m - 1) // m) * m


def _critic_kernel(x_ref, w_ref, b_ref, o_ref, *, c2, lane_w, tbh, n_pad, n_valid):
    """One grid step: tb = 2*tbh batch elements, two per 128-lane vreg.

    Stream A (batches [0, tbh) of this block) lives in lanes [0, lane_w/2),
    stream B (batches [tbh, 2*tbh)) in lanes [lane_w/2, lane_w).  Every weight
    block in w_ref is the block-diagonal [[W, 0], [0, W]] so one matmul advances
    both streams.  Bias-add / ReLU / node-sum stay in f32.
    """
    f32 = jnp.float32
    cdt = w_ref.dtype  # matmul operand dtype (bf16 by default); accumulation is f32

    def mm(a, w):
        return jnp.dot(a.astype(cdt), w, preferred_element_type=f32)

    relu = lambda v: jnp.maximum(v, 0.0)
    h = lane_w

    x = x_ref[...]                                               # [Mh, c2]
    r = c2

    # Fused encoders (block-diagonal weight): z = [loc_z | dep_z | arr_z] per stream.
    z = mm(x, w_ref[0:c2, :]) + b_ref[0:1, :]

    # dist_map: Linear(2*Hdist -> Hloc), ReLU, Linear(Hloc -> Hloc).
    dh = relu(mm(z, w_ref[r:r + h, :]) + b_ref[1:2, :]); r += h
    dz = mm(dh, w_ref[r:r + h, :]) + b_ref[2:3, :];      r += h

    # mix_map on concat([loc_z, dist_z]) via split matmuls (no lane concat).
    mh = relu(mm(z, w_ref[r:r + h, :]) + mm(dz, w_ref[r + h:r + 2 * h, :])
              + b_ref[3:4, :]);                           r += 2 * h
    a1 = relu(mm(mh, w_ref[r:r + h, :]) + b_ref[4:5, :]); r += h   # relu(mixed_z)
    a2 = relu(mm(a1, w_ref[r:r + h, :]) + b_ref[5:6, :]); r += h   # conv1 + relu
    a3 = relu(mm(a2, w_ref[r:r + h, :]) + b_ref[6:7, :]); r += h   # conv2 + relu (+const-1 ch)

    # conv3 + node-sum fold: per-node scalar = a3 . wc3_row (bc3 rides on the
    # constant-one channel), then a group-sum over each batch element's node rows.
    node_s = a3 * b_ref[7:8, :]                                  # [Mh, lane_w]
    g = node_s.reshape(tbh, n_pad, h)
    if n_valid < n_pad:  # zero padded node rows (their biases make them nonzero)
        nid = lax.broadcasted_iota(jnp.int32, (tbh, n_pad, 1), 1)
        g = g * (nid < n_valid).astype(f32)
    gs = jnp.sum(g, axis=1)                                      # [tbh, lane_w]
    half = h // 2
    s_a = jnp.sum(gs[:, :half], axis=-1, keepdims=True)         # [tbh, 1] batches 0..tbh-1
    s_b = jnp.sum(gs[:, half:], axis=-1, keepdims=True)         # [tbh, 1] batches tbh..2tbh-1
    o_ref[...] = jnp.concatenate([s_a, s_b], axis=0)            # [tb, 1]


def critic_forward(loc, demand, dist_u, dist_v, params, n_agents, svd_q,
                   *, compute_dtype=jnp.bfloat16, max_tb=1024, max_rows_half=8192):
    """loc [B,N,2], demand [B,N-n_agents], dist_u/dist_v [B,N,>=svd_q] -> [B,1].

    compute_dtype is the MXU operand dtype (bf16 by default; pass jnp.float32 for
    exact parity); accumulation, bias-add, ReLU and the node-sum are always f32.
    NOTE: in production jit this wrapper and cache the packed weight slabs.
    """
    B, N, _ = loc.shape
    q = svd_q
    f32 = jnp.float32
    cch = _CONV_CH

    hloc = params["wloc"].shape[1]
    hdist = params["wdep"].shape[1]
    hh = _round_up(max(hloc + 2 * hdist, hloc, cch + 1), 8)  # per-stream lane width
    lane_w = 2 * hh                                          # two-stream packed width
    c_raw = 3 + 2 * q
    c_in = _round_up(c_raw, 8)
    c2 = 2 * c_in

    # Static guards for the conv3/bc3 fold: the constant-one channel must exist
    # and conv2 (W7) must not write into it (its column `cch` stays all-zero).
    assert cch < hh, "need a spare lane for the constant-one (bc3) channel"
    assert params["wc1"].shape == (hloc, cch)
    assert params["wc2"].shape == (cch, cch)
    assert params["wc3"].shape == (cch, 1)
    assert hloc + 2 * hdist <= hh

    # ---- tile sizing --------------------------------------------------------
    n_pad = _round_up(N, 8)
    pairs_cap = max(8, max_rows_half // n_pad)               # batch pairs per grid step
    tb = min(max_tb, _round_up(B, 16), max(16, (2 * pairs_cap) // 16 * 16))
    tb = max(16, tb)
    # v7x has two TensorCores that only split work across grid steps: prefer >= 2
    # grid blocks when the batch allows it (harmless on v5e/v6e).
    while tb > 16 and (B + tb - 1) // tb < 2:
        tb = max(16, _round_up(tb // 2, 16))
    b_pad = _round_up(B, tb)
    num_blocks = b_pad // tb
    tbh = tb // 2
    mh_rows = tbh * n_pad

    # ---- pack per-node inputs: one concat + one pad + stream packing --------
    aug_demand = jnp.concatenate(
        [-jnp.ones((B, n_agents), f32), demand.astype(f32)], axis=1)        # [B, N]
    feat = jnp.concatenate(
        [loc.astype(f32), aug_demand[..., None],
         dist_u[:, :, :q].astype(f32), dist_v[:, :, :q].astype(f32)], axis=-1)
    feat = jnp.pad(feat, ((0, b_pad - B), (0, n_pad - N), (0, c_in - c_raw)))
    feat = feat.reshape(num_blocks, 2, tbh, n_pad, c_in)
    # lanes [0:c_in) <- first half of each block's batches; [c_in:2c_in) <- second half
    x = jnp.concatenate([feat[:, 0], feat[:, 1]], axis=-1)
    x = x.reshape(num_blocks * mh_rows, c2).astype(compute_dtype)

    # ---- pack weights: per-layer [K, hh] blocks -> block-diagonal [2K, lane_w] ----
    def w64(rows):
        return jnp.zeros((rows, hh), f32)

    w0 = w64(c_in)
    w0 = w0.at[0:3, 0:hloc].set(params["wloc"])
    w0 = w0.at[3:3 + q, hloc:hloc + hdist].set(params["wdep"])
    w0 = w0.at[3 + q:3 + 2 * q, hloc + hdist:hloc + 2 * hdist].set(params["warr"])
    w1 = w64(hh)
    w1 = w1.at[hloc:hloc + hdist, 0:hloc].set(params["wd1a"])
    w1 = w1.at[hloc + hdist:hloc + 2 * hdist, 0:hloc].set(params["wd1b"])
    w2 = w64(hh).at[0:hloc, 0:hloc].set(params["wd2"])
    w3 = w64(hh).at[0:hloc, 0:hloc].set(params["wm1a"])
    w4 = w64(hh).at[0:hloc, 0:hloc].set(params["wm1b"])
    w5 = w64(hh).at[0:hloc, 0:hloc].set(params["wm2"])
    w6 = w64(hh).at[0:hloc, 0:cch].set(params["wc1"])
    w7 = w64(hh).at[0:cch, 0:cch].set(params["wc2"])      # column `cch` stays zero

    def dup(w):  # [K, hh] -> [[w, 0], [0, w]] : [2K, lane_w]
        zz = jnp.zeros_like(w)
        return jnp.concatenate(
            [jnp.concatenate([w, zz], axis=1),
             jnp.concatenate([zz, w], axis=1)], axis=0)

    w_slab = jnp.concatenate(
        [dup(w0), dup(w1), dup(w2), dup(w3), dup(w4), dup(w5), dup(w6), dup(w7)],
        axis=0).astype(compute_dtype)                       # [c2 + 7*lane_w, lane_w]

    b64 = jnp.zeros((8, hh), f32)
    b64 = b64.at[0, 0:hloc].set(params["bloc"][0])
    b64 = b64.at[0, hloc:hloc + hdist].set(params["bdep"][0])
    b64 = b64.at[0, hloc + hdist:hloc + 2 * hdist].set(params["barr"][0])
    b64 = b64.at[1, 0:hloc].set(params["bd1"][0])
    b64 = b64.at[2, 0:hloc].set(params["bd2"][0])
    b64 = b64.at[3, 0:hloc].set(params["bm1"][0])
    b64 = b64.at[4, 0:hloc].set(params["bm2"][0])
    b64 = b64.at[5, 0:cch].set(params["bc1"][0])
    b64 = b64.at[6, 0:cch].set(params["bc2"][0])
    b64 = b64.at[6, cch].set(1.0)                           # constant-one channel
    b64 = b64.at[7, 0:cch].set(params["wc3"][:, 0])
    b64 = b64.at[7, cch].set(params["bc3"][0, 0])           # bc3 folded onto const channel
    b_slab = jnp.concatenate([b64, b64], axis=1)            # [8, lane_w], f32

    kernel = functools.partial(
        _critic_kernel, c2=c2, lane_w=lane_w, tbh=tbh, n_pad=n_pad, n_valid=N)

    out = pl.pallas_call(
        kernel,
        out_shape=jax.ShapeDtypeStruct((b_pad, 1), f32),
        grid_spec=pltpu.PrefetchScalarGridSpec(
            num_scalar_prefetch=0,
            grid=(num_blocks,),
            in_specs=[
                pl.BlockSpec((mh_rows, c2), lambda b: (b, 0)),
                pl.BlockSpec(w_slab.shape, lambda b: (0, 0)),
                pl.BlockSpec(b_slab.shape, lambda b: (0, 0)),
            ],
            out_specs=pl.BlockSpec((tb, 1), lambda b: (b, 0)),
        ),
        compiler_params=pltpu.CompilerParams(
            dimension_semantics=("parallel",),
            vmem_limit_bytes=48 * 1024 * 1024),
    )(x, w_slab, b_slab)
    return out[:B]


def critic_reference(loc, demand, dist_u, dist_v, params, n_agents, svd_q):
    """Pure-JAX reference mirroring the PyTorch forward (explicit concats)."""
    B = loc.shape[0]
    aug_demand = jnp.concatenate(
        [-jnp.ones((B, n_agents), jnp.float32), demand], axis=1)
    loc_x = jnp.concatenate([loc, aug_demand[..., None]], axis=-1)
    loc_z = loc_x @ params["wloc"] + params["bloc"]
    dep_z = dist_u[:, :, :svd_q] @ params["wdep"] + params["bdep"]
    arr_z = dist_v[:, :, :svd_q] @ params["warr"] + params["barr"]
    dist_cat = jnp.concatenate([dep_z, arr_z], axis=-1)
    wd1 = jnp.concatenate([params["wd1a"], params["wd1b"]], axis=0)
    dist_h = jax.nn.relu(dist_cat @ wd1 + params["bd1"])
    dist_z = dist_h @ params["wd2"] + params["bd2"]
    mix_cat = jnp.concatenate([loc_z, dist_z], axis=-1)
    wm1 = jnp.concatenate([params["wm1a"], params["wm1b"]], axis=0)
    mix_h = jax.nn.relu(mix_cat @ wm1 + params["bm1"])
    mixed_z = mix_h @ params["wm2"] + params["bm2"]
    hgt = jax.nn.relu(mixed_z)
    hgt = jax.nn.relu(hgt @ params["wc1"] + params["bc1"])
    hgt = jax.nn.relu(hgt @ params["wc2"] + params["bc2"])
    out = hgt @ params["wc3"] + params["bc3"]          # [B, N, 1]
    return out.sum(axis=1)                             # [B, 1]


def init_params(key, hloc=32, hdist=16, q=4):
    """Deterministic xavier_uniform weights, small random biases."""
    dims = {
        "wloc": (3, hloc), "bloc": (1, hloc),
        "wdep": (q, hdist), "bdep": (1, hdist),
        "warr": (q, hdist), "barr": (1, hdist),
        "wd1a": (hdist, hloc), "wd1b": (hdist, hloc), "bd1": (1, hloc),
        "wd2": (hloc, hloc), "bd2": (1, hloc),
        "wm1a": (hloc, hloc), "wm1b": (hloc, hloc), "bm1": (1, hloc),
        "wm2": (hloc, hloc), "bm2": (1, hloc),
        "wc1": (hloc, _CONV_CH), "bc1": (1, _CONV_CH),
        "wc2": (_CONV_CH, _CONV_CH), "bc2": (1, _CONV_CH),
        "wc3": (_CONV_CH, 1), "bc3": (1, 1),
    }
    names = sorted(dims)
    keys = jax.random.split(key, len(names))
    params = {}
    for k, name in zip(keys, names):
        shape = dims[name]
        if name.startswith("w"):
            fan_in, fan_out = shape
            limit = float(np.sqrt(6.0 / (fan_in + fan_out)))
            params[name] = jax.random.uniform(k, shape, jnp.float32, -limit, limit)
        else:
            params[name] = jax.random.uniform(k, shape, jnp.float32, -0.1, 0.1)
    return params


if __name__ == "__main__":
    key = jax.random.PRNGKey(0)
    n_agents, svd_q, hloc, hdist = 2, 4, 32, 16

    kp, kc1, kc2 = jax.random.split(key, 3)
    params = init_params(kp, hloc=hloc, hdist=hdist, q=svd_q)

    def make_case(k, batch, n_nodes):
        k1, k2, k3, k4 = jax.random.split(k, 4)
        return (jax.random.uniform(k1, (batch, n_nodes, 2), jnp.float32),
                jax.random.uniform(k2, (batch, n_nodes - n_agents), jnp.float32),
                jax.random.normal(k3, (batch, n_nodes, 6), jnp.float32),
                jax.random.normal(k4, (batch, n_nodes, 6), jnp.float32))

    # Case 1: tiny batch, N=10 (not a multiple of 8) -> node-padding mask path.
    # Case 2: B=37 -> multi-block grid, batch padding, both lane streams exercised.
    for name, args in (("case1", make_case(kc1, 2, 10)),
                       ("case2", make_case(kc2, 37, 10))):
        ref = critic_reference(*args, params, n_agents, svd_q)
        out_f32 = critic_forward(*args, params, n_agents, svd_q,
                                 compute_dtype=jnp.float32)
        out_bf16 = critic_forward(*args, params, n_agents, svd_q)   # bf16 default
        jax.block_until_ready((out_f32, out_bf16))
        assert out_f32.shape == ref.shape, (name, out_f32.shape, ref.shape)
        np.testing.assert_allclose(np.asarray(out_f32), np.asarray(ref),
                                   rtol=1e-3, atol=1e-3, err_msg=name + " f32")
        np.testing.assert_allclose(np.asarray(out_bf16), np.asarray(ref),
                                   rtol=5e-2, atol=5e-2, err_msg=name + " bf16")

    print("KERNEL_OK")
</pallas_src>

<mosaic_0001>
module attributes {stable_mosaic.version = 11 : i64} {
  func.func @_critic_kernel(%arg0: i32, %arg1: memref<128x32xf32, #tpu.memory_space<vmem>>, %arg2: memref<928x128xf32, #tpu.memory_space<vmem>>, %arg3: memref<8x128xf32, #tpu.memory_space<vmem>>, %arg4: memref<16x1xf32, #tpu.memory_space<vmem>>) attributes {dimension_semantics = [#tpu.dimension_semantics<parallel>], iteration_bounds = array<i64: 1>, scalar_prefetch = 0 : i64, scratch_operands = 0 : i64, tpu.core_type = #tpu.core_type<tc>, window_params = [{transform_indices = @transform_0, window_bounds = array<i64: 128, 32>}, {pipeline_mode = #tpu.pipeline_mode<synchronous>, transform_indices = @transform_1, window_bounds = array<i64: 928, 128>}, {pipeline_mode = #tpu.pipeline_mode<synchronous>, transform_indices = @transform_2, window_bounds = array<i64: 8, 128>}, {transform_indices = @transform_3, window_bounds = array<i64: 16, 1>}]} {
    %c0 = arith.constant 0 : index
    %c0_0 = arith.constant 0 : index
    %0 = vector.load %arg1[%c0, %c0_0] : memref<128x32xf32, #tpu.memory_space<vmem>>, vector<128x32xf32>
    %c0_1 = arith.constant 0 : index
    %c0_2 = arith.constant 0 : index
    %1 = vector.load %arg2[%c0_1, %c0_2] : memref<928x128xf32, #tpu.memory_space<vmem>>, vector<32x128xf32>
    %cst = arith.constant dense<0.000000e+00> : vector<128x128xf32>
    %2 = tpu.matmul %0, %1, %cst {dimension_numbers = #tpu.dot_dimension_numbers<[1], [0], [0], [1], [0, 0, 1, 1], [], []>} : vector<128x32xf32>, vector<32x128xf32>, vector<128x128xf32> -> vector<128x128xf32>
    %c0_3 = arith.constant 0 : index
    %c0_4 = arith.constant 0 : index
    %3 = vector.load %arg3[%c0_3, %c0_4] : memref<8x128xf32, #tpu.memory_space<vmem>>, vector<1x128xf32>
    %4 = vector.broadcast %3 : vector<1x128xf32> to vector<128x128xf32>
    %5 = arith.addf %2, %4 : vector<128x128xf32>
    %c32 = arith.constant 32 : index
    %c0_5 = arith.constant 0 : index
    %6 = vector.load %arg2[%c32, %c0_5] : memref<928x128xf32, #tpu.memory_space<vmem>>, vector<128x128xf32>
    %cst_6 = arith.constant dense<0.000000e+00> : vector<128x128xf32>
    %7 = tpu.matmul %5, %6, %cst_6 {dimension_numbers = #tpu.dot_dimension_numbers<[1], [0], [0], [1], [0, 0, 1, 1], [], []>} : vector<128x128xf32>, vector<128x128xf32>, vector<128x128xf32> -> vector<128x128xf32>
    %c1 = arith.constant 1 : index
    %c0_7 = arith.constant 0 : index
    %8 = vector.load %arg3[%c1, %c0_7] : memref<8x128xf32, #tpu.memory_space<vmem>>, vector<1x128xf32>
    %9 = vector.broadcast %8 : vector<1x128xf32> to vector<128x128xf32>
    %10 = arith.addf %7, %9 : vector<128x128xf32>
    %cst_8 = arith.constant 0.000000e+00 : f32
    %11 = vector.broadcast %cst_8 : f32 to vector<128x128xf32>
    %12 = arith.maximumf %10, %11 : vector<128x128xf32>
    %c160 = arith.constant 160 : index
    %c0_9 = arith.constant 0 : index
    %13 = vector.load %arg2[%c160, %c0_9] : memref<928x128xf32, #tpu.memory_space<vmem>>, vector<128x128xf32>
    %cst_10 = arith.constant dense<0.000000e+00> : vector<128x128xf32>
    %14 = tpu.matmul %12, %13, %cst_10 {dimension_numbers = #tpu.dot_dimension_numbers<[1], [0], [0], [1], [0, 0, 1, 1], [], []>} : vector<128x128xf32>, vector<128x128xf32>, vector<128x128xf32> -> vector<128x128xf32>
    %c2 = arith.constant 2 : index
    %c0_11 = arith.constant 0 : index
    %15 = vector.load %arg3[%c2, %c0_11] : memref<8x128xf32, #tpu.memory_space<vmem>>, vector<1x128xf32>
    %16 = vector.broadcast %15 : vector<1x128xf32> to vector<128x128xf32>
    %17 = arith.addf %14, %16 : vector<128x128xf32>
    %c288 = arith.constant 288 : index
    %c0_12 = arith.constant 0 : index
    %18 = vector.load %arg2[%c288, %c0_12] : memref<928x128xf32, #tpu.memory_space<vmem>>, vector<128x128xf32>
    %cst_13 = arith.constant dense<0.000000e+00> : vector<128x128xf32>
    %19 = tpu.matmul %5, %18, %cst_13 {dimension_numbers = #tpu.dot_dimension_numbers<[1], [0], [0], [1], [0, 0, 1, 1], [], []>} : vector<128x128xf32>, vector<128x128xf32>, vector<128x128xf32> -> vector<128x128xf32>
    %c416 = arith.constant 416 : index
    %c0_14 = arith.constant 0 : index
    %20 = vector.load %arg2[%c416, %c0_14] : memref<928x128xf32, #tpu.memory_space<vmem>>, vector<128x128xf32>
    %cst_15 = arith.constant dense<0.000000e+00> : vector<128x128xf32>
    %21 = tpu.matmul %17, %20, %cst_15 {dimension_numbers = #tpu.dot_dimension_numbers<[1], [0], [0], [1], [0, 0, 1, 1], [], []>} : vector<128x128xf32>, vector<128x128xf32>, vector<128x128xf32> -> vector<128x128xf32>
    %22 = arith.addf %19, %21 : vector<128x128xf32>
    %c3 = arith.constant 3 : index
    %c0_16 = arith.constant 0 : index
    %23 = vector.load %arg3[%c3, %c0_16] : memref<8x128xf32, #tpu.memory_space<vmem>>, vector<1x128xf32>
    %24 = vector.broadcast %23 : vector<1x128xf32> to vector<128x128xf32>
    %25 = arith.addf %22, %24 : vector<128x128xf32>
    %cst_17 = arith.constant 0.000000e+00 : f32
    %26 = vector.broadcast %cst_17 : f32 to vector<128x128xf32>
    %27 = arith.maximumf %25, %26 : vector<128x128xf32>
    %c544 = arith.constant 544 : index
    %c0_18 = arith.constant 0 : index
    %28 = vector.load %arg2[%c544, %c0_18] : memref<928x128xf32, #tpu.memory_space<vmem>>, vector<128x128xf32>
    %cst_19 = arith.constant dense<0.000000e+00> : vector<128x128xf32>
    %29 = tpu.matmul %27, %28, %cst_19 {dimension_numbers = #tpu.dot_dimension_numbers<[1], [0], [0], [1], [0, 0, 1, 1], [], []>} : vector<128x128xf32>, vector<128x128xf32>, vector<128x128xf32> -> vector<128x128xf32>
    %c4 = arith.constant 4 : index
    %c0_20 = arith.constant 0 : index
    %30 = vector.load %arg3[%c4, %c0_20] : memref<8x128xf32, #tpu.memory_space<vmem>>, vector<1x128xf32>
    %31 = vector.broadcast %30 : vector<1x128xf32> to vector<128x128xf32>
    %32 = arith.addf %29, %31 : vector<128x128xf32>
    %cst_21 = arith.constant 0.000000e+00 : f32
    %33 = vector.broadcast %cst_21 : f32 to vector<128x128xf32>
    %34 = arith.maximumf %32, %33 : vector<128x128xf32>
    %c672 = arith.constant 672 : index
    %c0_22 = arith.constant 0 : index
    %35 = vector.load %arg2[%c672, %c0_22] : memref<928x128xf32, #tpu.memory_space<vmem>>, vector<128x128xf32>
    %cst_23 = arith.constant dense<0.000000e+00> : vector<128x128xf32>
    %36 = tpu.matmul %34, %35, %cst_23 {dimension_numbers = #tpu.dot_dimension_numbers<[1], [0], [0], [1], [0, 0, 1, 1], [], []>} : vector<128x128xf32>, vector<128x128xf32>, vector<128x128xf32> -> vector<128x128xf32>
    %c5 = arith.constant 5 : index
    %c0_24 = arith.constant 0 : index
    %37 = vector.load %arg3[%c5, %c0_24] : memref<8x128xf32, #tpu.memory_space<vmem>>, vector<1x128xf32>
    %38 = vector.broadcast %37 : vector<1x128xf32> to vector<128x128xf32>
    %39 = arith.addf %36, %38 : vector<128x128xf32>
    %cst_25 = arith.constant 0.000000e+00 : f32
    %40 = vector.broadcast %cst_25 : f32 to vector<128x128xf32>
    %41 = arith.maximumf %39, %40 : vector<128x128xf32>
    %c800 = arith.constant 800 : index
    %c0_26 = arith.constant 0 : index
    %42 = vector.load %arg2[%c800, %c0_26] : memref<928x128xf32, #tpu.memory_space<vmem>>, vector<128x128xf32>
    %cst_27 = arith.constant dense<0.000000e+00> : vector<128x128xf32>
    %43 = tpu.matmul %41, %42, %cst_27 {dimension_numbers = #tpu.dot_dimension_numbers<[1], [0], [0], [1], [0, 0, 1, 1], [], []>} : vector<128x128xf32>, vector<128x128xf32>, vector<128x128xf32> -> vector<128x128xf32>
    %c6 = arith.constant 6 : index
    %c0_28 = arith.constant 0 : index
    %44 = vector.load %arg3[%c6, %c0_28] : memref<8x128xf32, #tpu.memory_space<vmem>>, vector<1x128xf32>
    %45 = vector.broadcast %44 : vector<1x128xf32> to vector<128x128xf32>
    %46 = arith.addf %43, %45 : vector<128x128xf32>
    %cst_29 = arith.constant 0.000000e+00 : f32
    %47 = vector.broadcast %cst_29 : f32 to vector<128x128xf32>
    %48 = arith.maximumf %46, %47 : vector<128x128xf32>
    %c7 = arith.constant 7 : index
    %c0_30 = arith.constant 0 : index
    %49 = vector.load %arg3[%c7, %c0_30] : memref<8x128xf32, #tpu.memory_space<vmem>>, vector<1x128xf32>
    %50 = vector.broadcast %49 : vector<1x128xf32> to vector<128x128xf32>
    %51 = arith.mulf %48, %50 : vector<128x128xf32>
    %52 = vector.shape_cast %51 : vector<128x128xf32> to vector<8x16x128xf32>
    %53 = tpu.iota {dimensions = array<i32: 1>} : vector<8x16x1xi32>
    %c10_i32 = arith.constant 10 : i32
    %54 = vector.broadcast %c10_i32 : i32 to vector<8x16x1xi32>
    %55 = arith.cmpi slt, %53, %54 : vector<8x16x1xi32>
    %56 = arith.extui %55 : vector<8x16x1xi1> to vector<8x16x1xi32>
    %57 = arith.sitofp %56 : vector<8x16x1xi32> to vector<8x16x1xf32>
    %58 = vector.broadcast %57 : vector<8x16x1xf32> to vector<8x16x128xf32>
    %59 = arith.mulf %52, %58 : vector<8x16x128xf32>
    %cst_31 = arith.constant dense<0.000000e+00> : vector<8x128xf32>
    %60 = vector.multi_reduction <add>, %59, %cst_31 [1] : vector<8x16x128xf32> to vector<8x128xf32>
    %61 = vector.extract_strided_slice %60 {offsets = [0, 0], sizes = [8, 64], strides = [1, 1]} : vector<8x128xf32> to vector<8x64xf32>
    %cst_32 = arith.constant dense<0.000000e+00> : vector<8xf32>
    %62 = vector.multi_reduction <add>, %61, %cst_32 [1] : vector<8x64xf32> to vector<8xf32>
    %63 = vector.shape_cast %62 : vector<8xf32> to vector<8x1xf32>
    %64 = vector.extract_strided_slice %60 {offsets = [0, 64], sizes = [8, 64], strides = [1, 1]} : vector<8x128xf32> to vector<8x64xf32>
    %cst_33 = arith.constant dense<0.000000e+00> : vector<8xf32>
    %65 = vector.multi_reduction <add>, %64, %cst_33 [1] : vector<8x64xf32> to vector<8xf32>
    %66 = vector.shape_cast %65 : vector<8xf32> to vector<8x1xf32>
    %67 = tpu.concatenate %63, %66 in 0 : vector<8x1xf32>, vector<8x1xf32> -> vector<16x1xf32>
    %c0_34 = arith.constant 0 : index
    %c0_35 = arith.constant 0 : index
    %68 = vector.load %arg4[%c0_34, %c0_35] : memref<16x1xf32, #tpu.memory_space<vmem>>, vector<16x1xf32>
    tpu.vector_store %arg4[%c0_34, %c0_35], %67 {strides = array<i32>} : memref<16x1xf32, #tpu.memory_space<vmem>>, vector<16x1xf32>,
    return
  }
  func.func @transform_0(%arg0: i32) -> (i32, i32) {
    %c0_i32 = arith.constant 0 : i32
    %c0_i32_0 = arith.constant 0 : i32
    return %arg0, %c0_i32 : i32, i32
  }
  func.func @transform_1(%arg0: i32) -> (i32, i32) {
    %c0_i32 = arith.constant 0 : i32
    %c0_i32_0 = arith.constant 0 : i32
    %c0_i32_1 = arith.constant 0 : i32
    return %c0_i32, %c0_i32_0 : i32, i32
  }
  func.func @transform_2(%arg0: i32) -> (i32, i32) {
    %c0_i32 = arith.constant 0 : i32
    %c0_i32_0 = arith.constant 0 : i32
    %c0_i32_1 = arith.constant 0 : i32
    return %c0_i32, %c0_i32_0 : i32, i32
  }
  func.func @transform_3(%arg0: i32) -> (i32, i32) {
    %c0_i32 = arith.constant 0 : i32
    %c0_i32_0 = arith.constant 0 : i32
    return %arg0, %c0_i32 : i32, i32
  }
}

</mosaic_0001>

<bundles_post_ra>
// kernel: tpu_custom_call.1
= control target key start
LH: loop header
LB: loop body
LE: loop exit
PB: predicated region body
PF: predicated region fallthrough
CT: control target
= control target key end

     0   :  { %8 = vsyncpa [#allocation3], 0  ;;  %s1037_s15 = smov [#allocation2]   ;;  %s1038_s17 = smov 128   ;;  %s1298_s0 = inlined_call_operand.vmem [shape: f32[128,32], index: 0, kind: input, shape index: {}]   ;;  %s1299_s1 = inlined_call_operand.hbm [shape: f32[928,128], index: 1, kind: input, shape index: {}]   ;;  %s1300_s2 = inlined_call_operand.vmem [shape: f32[8,128], index: 2, kind: input, shape index: {}]   ;;  %s1301_s3 = inlined_call_operand.vmem [shape: f32[16,1], index: 3, kind: output, shape index: {}]  }
   0x1   :  { %s15_s14 = sshll.u32 %s1299_s1, 4  ;;  %s17_s16 = sshll.u32 %s1037_s15, 4  ;;  %s16_s14 = int_to_ptr.hbm [resolvable:$true] %s15_s14  ;;  %s18_s16 = int_to_ptr.vmem [resolvable:$true] %s17_s16 }
   0x2   :  { %s1039_s18 = smov 8  }
   0x3   :  { %23 = dma.hbm_to_vmem [thread:$0]  %s16_s14, 14848, %s18_s16, [#allocation3], %s1038_s17, %s1038_s17, %s1039_s18  }
   0x4   :  { %1035 = dma.done.wait [#allocation3], 14848  }
   0x5   :  { %1036 = vsyncadd [#allocation3], 4294952448  ;;  %v49_v0 = vld [vmem:[#allocation2 + $0x18] sm:$0xff]  ;;  %v48_v1 = vld [vmem:[#allocation2 + $0x10] sm:$0xff]  ;;  %vm52_vm0 = vcmask 261120   ;;  %vm948_vm2 = vcmask 1041409  }
   0x6   :  { %113 = vmatpush.msra.mxu0 %v49_v0  ;;  %v47_v2 = vld [vmem:[#allocation2 + $0x8] sm:$0xff]  ;;  %v46_v3 = vld [vmem:[#allocation2] sm:$0xff]  ;;  %v32_v6 = vld [vmem:[%s1298_s0 + $0x10] sm:$0xff]  ;;  %vm950_vm3 = vcmask 1042434   ;;  %vm952_vm4 = vcmask 1043459   ;;  %vm954_vm5 = vcmask 1044484  }
   0x7   :  { %v30_v4 = vld [vmem:[%s1298_s0] sm:$0xff]  ;;  %v31_v5 = vld [vmem:[%s1298_s0 + $0x8] sm:$0xff]  ;;  %v33_v7 = vld [vmem:[%s1298_s0 + $0x18] sm:$0xff]  ;;  %vm956_vm6 = vcmask 1045509   ;;  %vm958_vm7 = vcmask 1046534   ;;  %vm960_vm8 = vcmask 1047559  }
   0x8   :  { %114 = vmatpush.msra.mxu0 %v48_v1  ;;  %v34_v8 = vld [vmem:[%s1298_s0 + $0x20] sm:$0xff]  ;;  %v35_v9 = vld [vmem:[%s1298_s0 + $0x28] sm:$0xff]  ;;  %v36_v10 = vld [vmem:[%s1298_s0 + $0x30] sm:$0xff]  ;;  %vm963_vm9 = vcmask 523264   ;;  %vm973_vm10 = vcmask 7168  }
   0x9   :  { %v37_v11 = vld [vmem:[%s1298_s0 + $0x38] sm:$0xff]  ;;  %v38_v12 = vld [vmem:[%s1298_s0 + $0x40] sm:$0xff]  ;;  %v180_v15 = vld [vmem:[#allocation2 + $0x90] sm:$0xff] }
   0xa   :  { %115 = vmatpush.msra.mxu0 %v47_v2  ;;  %v181_v13 = vld [vmem:[#allocation2 + $0x98] sm:$0xff]  ;;  %v362_v16 = vld [vmem:[#allocation2 + $0x190] sm:$0xff]  ;;  %v179_v17 = vld [vmem:[#allocation2 + $0x88] sm:$0xff] }
   0xb   :  { %v363_v14 = vld [vmem:[#allocation2 + $0x198] sm:$0xff]  ;;  %184 = vmatpush.msra.mxu1 %v181_v13  ;;  %v361_v18 = vld [vmem:[#allocation2 + $0x188] sm:$0xff]  ;;  %v178_v19 = vld [vmem:[#allocation2 + $0x80] sm:$0xff] }
   0xc   :  { %116 = vmatpush.msra.mxu0 %v46_v3  ;;  %v360_v20 = vld [vmem:[#allocation2 + $0x180] sm:$0xff]  ;;  %v39_v21 = vld [vmem:[%s1298_s0 + $0x48] sm:$0xff]  ;;  %v177_v22 = vld [vmem:[#allocation2 + $0x78] sm:$0xff] }
   0xd   :  { %981 = vmatmul.msk.f32.vlgmr.msra.gmra.mxu0 %vm52_vm0, %v30_v4  ;;  %185 = vmatpush.msra.mxu1 %v180_v15  ;;  %v359_v23 = vld [vmem:[#allocation2 + $0x178] sm:$0xff]  ;;  %v176_v24 = vld [vmem:[#allocation2 + $0x70] sm:$0xff]  ;;  %v175_v26 = vld [vmem:[#allocation2 + $0x68] sm:$0xff] }
   0xe   :  { %445 = vmatpush.msrb.mxu0 %v363_v14  ;;  %v358_v25 = vld [vmem:[#allocation2 + $0x170] sm:$0xff]  ;;  %v357_v27 = vld [vmem:[#allocation2 + $0x168] sm:$0xff]  ;;  %v174_v28 = vld [vmem:[#allocation2 + $0x60] sm:$0xff] }
   0xf   :  { %186 = vmatpush.msra.mxu1 %v179_v17  ;;  %v356_v29 = vld [vmem:[#allocation2 + $0x160] sm:$0xff]  ;;  %v40_v30 = vld [vmem:[%s1298_s0 + $0x50] sm:$0xff]  ;;  %v173_v31 = vld [vmem:[#allocation2 + $0x58] sm:$0xff] }
  0x10   :  { %446 = vmatpush.msrb.mxu0 %v362_v16  ;;  %v355_v32 = vld [vmem:[#allocation2 + $0x158] sm:$0xff]  ;;  %v172_v33 = vld [vmem:[#allocation2 + $0x50] sm:$0xff]  ;;  %v171_v35 = vld [vmem:[#allocation2 + $0x48] sm:$0xff] }
  0x11   :  { %187 = vmatpush.msra.mxu1 %v178_v19  ;;  %v354_v34 = vld [vmem:[#allocation2 + $0x150] sm:$0xff]  ;;  %v353_v36 = vld [vmem:[#allocation2 + $0x148] sm:$0xff]  ;;  %v170_v37 = vld [vmem:[#allocation2 + $0x40] sm:$0xff] }
  0x12   :  { %447 = vmatpush.msrb.mxu0 %v361_v18  ;;  %v352_v38 = vld [vmem:[#allocation2 + $0x140] sm:$0xff]  ;;  %v41_v39 = vld [vmem:[%s1298_s0 + $0x58] sm:$0xff]  ;;  %v168_v42 = vld [vmem:[#allocation2 + $0x30] sm:$0xff] }
  0x13   :  { %188 = vmatpush.msra.mxu1 %v177_v22  ;;  %v169_v40 = vld [vmem:[#allocation2 + $0x38] sm:$0xff]  ;;  %v350_v43 = vld [vmem:[#allocation2 + $0x130] sm:$0xff]  ;;  %v167_v44 = vld [vmem:[#allocation2 + $0x28] sm:$0xff] }
  0x14   :  { %448 = vmatpush.msrb.mxu0 %v360_v20  ;;  %v351_v41 = vld [vmem:[#allocation2 + $0x138] sm:$0xff]  ;;  %v349_v45 = vld [vmem:[#allocation2 + $0x128] sm:$0xff]  ;;  %v42_v46 = vld [vmem:[%s1298_s0 + $0x60] sm:$0xff] }
  0x15   :  { %982 = vmatmul.msk.f32.gmra.mxu0 %vm52_vm0, %v31_v5  ;;  %189 = vmatpush.msra.mxu1 %v176_v24  ;;  %v166_v47 = vld [vmem:[#allocation2 + $0x20] sm:$0xff]  ;;  %v43_v49 = vld [vmem:[%s1298_s0 + $0x68] sm:$0xff]  ;;  %v44_v50 = vld [vmem:[%s1298_s0 + $0x70] sm:$0xff] }
  0x16   :  { %449 = vmatpush.msrb.mxu0 %v359_v23  ;;  %v348_v48 = vld [vmem:[#allocation2 + $0x120] sm:$0xff]  ;;  %v45_v51 = vld [vmem:[%s1298_s0 + $0x78] sm:$0xff]  ;;  %v275_v14 = vld [vmem:[#allocation2 + $0xf0] sm:$0xff] }
  0x17   :  { %190 = vmatpush.msra.mxu1 %v175_v26  ;;  %v1132_v52 = vld [vmem:[%s1300_s2] ss:$0 sm:$0xff]  ;;  %v276_v13 = vld [vmem:[#allocation2 + $0xf8] sm:$0xff]  ;;  %v274_v17 = vld [vmem:[#allocation2 + $0xe8] sm:$0xff] }
  0x18   :  { %450 = vmatpush.msrb.mxu0 %v358_v25  ;;  %v273_v18 = vld [vmem:[#allocation2 + $0xe0] sm:$0xff]  ;;  %v272_v19 = vld [vmem:[#allocation2 + $0xd8] sm:$0xff]  ;;  %v271_v20 = vld [vmem:[#allocation2 + $0xd0] sm:$0xff] }
  0x19   :  { %191 = vmatpush.msra.mxu1 %v174_v28  ;;  %v270_v23 = vld [vmem:[#allocation2 + $0xc8] sm:$0xff]  ;;  %v269_v24 = vld [vmem:[#allocation2 + $0xc0] sm:$0xff]  ;;  %v268_v25 = vld [vmem:[#allocation2 + $0xb8] sm:$0xff] }
  0x1a   :  { %451 = vmatpush.msrb.mxu0 %v357_v27  ;;  %v267_v26 = vld [vmem:[#allocation2 + $0xb0] sm:$0xff] }
  0x1b   :  { %192 = vmatpush.msra.mxu1 %v173_v31 }
  0x1c   :  { %452 = vmatpush.msrb.mxu0 %v356_v29  ;;  %v266_v29 = vld [vmem:[#allocation2 + $0xa8] sm:$0xff] }
  0x1d   :  { %983 = vmatmul.msk.f32.gmra.mxu0 %vm52_vm0, %v32_v6  ;;  %193 = vmatpush.msra.mxu1 %v172_v33 }
  0x1e   :  { %453 = vmatpush.msrb.mxu0 %v355_v32 }
  0x1f   :  { %194 = vmatpush.msra.mxu1 %v171_v35 }
  0x20   :  { %454 = vmatpush.msrb.mxu0 %v354_v34 }
  0x21   :  { %195 = vmatpush.msra.mxu1 %v170_v37  ;;  %v1153_v37 = vld [vmem:[%s1300_s2 + $0x1] ss:$0 sm:$0xff] }
  0x22   :  { %455 = vmatpush.msrb.mxu0 %v353_v36 }
  0x23   :  { %196 = vmatpush.msra.mxu1 %v169_v40 }
  0x24   :  { %456 = vmatpush.msrb.mxu0 %v352_v38 }
  0x25   :  { %984 = vmatmul.msk.f32.gmra.mxu0 %vm52_vm0, %v33_v7  ;;  %197 = vmatpush.msra.mxu1 %v168_v42  ;;  %v280_v7 = vld [vmem:[#allocation2 + $0x118] sm:$0xff] }
  0x26   :  { %457 = vmatpush.msrb.mxu0 %v351_v41  ;;  %283 = vmatpush.msra.mxu2 %v280_v7 }
  0x27   :  { %198 = vmatpush.msra.mxu1 %v167_v44 }
  0x28   :  { %458 = vmatpush.msrb.mxu0 %v350_v43 }
  0x29   :  { %199 = vmatpush.msra.mxu1 %v166_v47 }
  0x2a   :  { %459 = vmatpush.msrb.mxu0 %v349_v45 }
  0x2c   :  { %460 = vmatpush.msrb.mxu0 %v348_v48 }
  0x2d   :  { %985 = vmatmul.msk.f32.gmra.mxu0 %vm52_vm0, %v34_v8  ;;  %v279_v8 = vld [vmem:[#allocation2 + $0x110] sm:$0xff] }
  0x2e   :  { %284 = vmatpush.msra.mxu2 %v279_v8 }
  0x35   :  { %986 = vmatmul.msk.f32.gmra.mxu0 %vm52_vm0, %v35_v9 }
  0x3d   :  { %987 = vmatmul.msk.f32.gmra.mxu0 %vm52_vm0, %v36_v10 }
  0x45   :  { %988 = vmatmul.msk.f32.gmra.mxu0 %vm52_vm0, %v37_v11  ;;  %v278_v11 = vld [vmem:[#allocation2 + $0x108] sm:$0xff] }
  0x46   :  { %285 = vmatpush.msra.mxu2 %v278_v11  ;;  %v375_v11 = vld [vmem:[#allocation2 + $0x1f8] sm:$0xff] }
  0x4d   :  { %989 = vmatmul.msk.f32.gmra.mxu0 %vm52_vm0, %v38_v12  ;;  %v277_v12 = vld [vmem:[#allocation2 + $0x100] sm:$0xff] }
  0x4e   :  { %286 = vmatpush.msra.mxu2 %v277_v12  ;;  %v374_v12 = vld [vmem:[#allocation2 + $0x1f0] sm:$0xff] }
  0x50   :  { %287 = vmatpush.msra.mxu2 %v276_v13  ;;  %v373_v13 = vld [vmem:[#allocation2 + $0x1e8] sm:$0xff] }
  0x52   :  { %288 = vmatpush.msra.mxu2 %v275_v14 }
  0x54   :  { %289 = vmatpush.msra.mxu2 %v274_v17 }
  0x55   :  { %990 = vmatmul.msk.f32.gmra.mxu0 %vm52_vm0, %v39_v21 }
  0x56   :  { %290 = vmatpush.msra.mxu2 %v273_v18  ;;  %v371_v18 = vld [vmem:[#allocation2 + $0x1d8] sm:$0xff] }
  0x58   :  { %291 = vmatpush.msra.mxu2 %v272_v19  ;;  %v370_v19 = vld [vmem:[#allocation2 + $0x1d0] sm:$0xff] }
  0x5a   :  { %292 = vmatpush.msra.mxu2 %v271_v20  ;;  %v369_v20 = vld [vmem:[#allocation2 + $0x1c8] sm:$0xff] }
  0x5c   :  { %293 = vmatpush.msra.mxu2 %v270_v23 }
  0x5d   :  { %991 = vmatmul.msk.f32.gmra.mxu0 %vm52_vm0, %v40_v30  ;;  %v265_v30 = vld [vmem:[#allocation2 + $0xa0] sm:$0xff] }
  0x5e   :  { %294 = vmatpush.msra.mxu2 %v269_v24  ;;  %v367_v24 = vld [vmem:[#allocation2 + $0x1b8] sm:$0xff] }
  0x60   :  { %295 = vmatpush.msra.mxu2 %v268_v25 }
  0x62   :  { %296 = vmatpush.msra.mxu2 %v267_v26  ;;  %v366_v26 = vld [vmem:[#allocation2 + $0x1b0] sm:$0xff] }
  0x64   :  { %297 = vmatpush.msra.mxu2 %v266_v29  ;;  %v364_v29 = vld [vmem:[#allocation2 + $0x1a0] sm:$0xff] }
  0x65   :  { %992 = vmatmul.msk.f32.gmra.mxu0 %vm52_vm0, %v41_v39 }
  0x66   :  { %298 = vmatpush.msra.mxu2 %v265_v30 }
  0x6d   :  { %993 = vmatmul.msk.f32.gmra.mxu0 %vm52_vm0, %v42_v46 }
  0x75   :  { %994 = vmatmul.msk.f32.gmra.mxu0 %vm52_vm0, %v43_v49 }
  0x7d   :  { %995 = vmatmul.msk.f32.gmra.mxu0 %vm52_vm0, %v44_v50 }
  0x85   :  { %996 = vmatmul.msk.f32.gmra.mxu0 %vm52_vm0, %v45_v51 }
  0x8a   :  { %v118_v53 = vpop.f32.mrf.mxu0 }
  0x8b   :  { %v119_v54 = vadd.f32 %v1132_v52, %v118_v53 }
  0x8d   :  { %200 = vmatmul.f32.vlgmr.msra.gmra.mxu1 %v119_v54  ;;  %461 = vmatmul.f32.vlgmr.msrb.gmra.mxu0 %v119_v54 }
  0x92   :  { %v121_v55 = vpop.f32.mrf.mxu0 }
  0x93   :  { %v122_v56 = vadd.f32 %v1132_v52, %v121_v55 }
  0x95   :  { %203 = vmatmul.f32.gmra.mxu1 %v122_v56  ;;  %464 = vmatmul.f32.gmra.mxu0 %v122_v56 }
  0x9a   :  { %v124_v57 = vpop.f32.mrf.mxu0 }
  0x9b   :  { %v125_v58 = vadd.f32 %v1132_v52, %v124_v57 }
  0x9d   :  { %206 = vmatmul.f32.gmra.mxu1 %v125_v58  ;;  %467 = vmatmul.f32.gmra.mxu0 %v125_v58 }
  0xa2   :  { %v127_v59 = vpop.f32.mrf.mxu0 }
  0xa3   :  { %v128_v60 = vadd.f32 %v1132_v52, %v127_v59 }
  0xa5   :  { %209 = vmatmul.f32.gmra.mxu1 %v128_v60  ;;  %470 = vmatmul.f32.gmra.mxu0 %v128_v60 }
  0xaa   :  { %v130_v61 = vpop.f32.mrf.mxu0 }
  0xab   :  { %v131_v62 = vadd.f32 %v1132_v52, %v130_v61 }
  0xad   :  { %212 = vmatmul.f32.gmra.mxu1 %v131_v62  ;;  %473 = vmatmul.f32.gmra.mxu0 %v131_v62 }
  0xb2   :  { %v133_v63 = vpop.f32.mrf.mxu0 }
  0xb3   :  { %v134_v0 = vadd.f32 %v1132_v52, %v133_v63 }
  0xb5   :  { %215 = vmatmul.f32.gmra.mxu1 %v134_v0  ;;  %476 = vmatmul.f32.gmra.mxu0 %v134_v0 }
  0xba   :  { %v136_v1 = vpop.f32.mrf.mxu0 }
  0xbb   :  { %v137_v2 = vadd.f32 %v1132_v52, %v136_v1 }
  0xbd   :  { %218 = vmatmul.f32.gmra.mxu1 %v137_v2  ;;  %479 = vmatmul.f32.gmra.mxu0 %v137_v2 }
  0xc2   :  { %v139_v3 = vpop.f32.mrf.mxu0 }
  0xc3   :  { %v140_v4 = vadd.f32 %v1132_v52, %v139_v3 }
  0xc5   :  { %221 = vmatmul.f32.gmra.mxu1 %v140_v4  ;;  %482 = vmatmul.f32.gmra.mxu0 %v140_v4  ;;  %v379_v4 = vld [vmem:[#allocation2 + $0x218] sm:$0xff] }
  0xc6   :  { %380 = vmatpush.msra.mxu3 %v379_v4  ;;  %v548_v4 = vld [vmem:[#allocation2 + $0x240] sm:$0xff] }
  0xca   :  { %v142_v5 = vpop.f32.mrf.mxu0 }
  0xcb   :  { %v143_v6 = vadd.f32 %v1132_v52, %v142_v5  ;;  %v378_v5 = vld [vmem:[#allocation2 + $0x210] sm:$0xff] }
  0xcc   :  { %381 = vmatpush.msra.mxu3 %v378_v5 }
  0xcd   :  { %224 = vmatmul.f32.gmra.mxu1 %v143_v6  ;;  %485 = vmatmul.f32.gmra.mxu0 %v143_v6  ;;  %v377_v6 = vld [vmem:[#allocation2 + $0x208] sm:$0xff] }
  0xce   :  { %382 = vmatpush.msra.mxu3 %v377_v6 }
  0xd2   :  { %v145_v9 = vpop.f32.mrf.mxu0 }
  0xd3   :  { %v146_v10 = vadd.f32 %v1132_v52, %v145_v9  ;;  %v376_v9 = vld [vmem:[#allocation2 + $0x200] sm:$0xff] }
  0xd4   :  { %383 = vmatpush.msra.mxu3 %v376_v9 }
  0xd5   :  { %227 = vmatmul.f32.gmra.mxu1 %v146_v10  ;;  %488 = vmatmul.f32.gmra.mxu0 %v146_v10 }
  0xd6   :  { %384 = vmatpush.msra.mxu3 %v375_v11 }
  0xd8   :  { %385 = vmatpush.msra.mxu3 %v374_v12 }
  0xda   :  { %v148_v15 = vpop.f32.mrf.mxu0  ;;  %386 = vmatpush.msra.mxu3 %v373_v13  ;;  %v545_v13 = vld [vmem:[#allocation2 + $0x228] sm:$0xff] }
  0xdb   :  { %v149_v16 = vadd.f32 %v1132_v52, %v148_v15 }
  0xdd   :  { %230 = vmatmul.f32.gmra.mxu1 %v149_v16  ;;  %491 = vmatmul.f32.gmra.mxu0 %v149_v16  ;;  %v372_v16 = vld [vmem:[#allocation2 + $0x1e0] sm:$0xff] }
  0xde   :  { %387 = vmatpush.msra.mxu3 %v372_v16 }
  0xe0   :  { %388 = vmatpush.msra.mxu3 %v371_v18 }
  0xe2   :  { %v151_v21 = vpop.f32.mrf.mxu0  ;;  %389 = vmatpush.msra.mxu3 %v370_v19 }
  0xe3   :  { %v152_v22 = vadd.f32 %v1132_v52, %v151_v21  ;;  %v368_v21 = vld [vmem:[#allocation2 + $0x1c0] sm:$0xff] }
  0xe4   :  { %390 = vmatpush.msra.mxu3 %v369_v20  ;;  %v658_v20 = vld [vmem:[#allocation2 + $0x318] sm:$0xff] }
  0xe5   :  { %233 = vmatmul.f32.gmra.mxu1 %v152_v22  ;;  %494 = vmatmul.f32.gmra.mxu0 %v152_v22 }
  0xe6   :  { %391 = vmatpush.msra.mxu3 %v368_v21  ;;  %661 = vmatpush.msrb.mxu2 %v658_v20 }
  0xe8   :  { %392 = vmatpush.msra.mxu3 %v367_v24  ;;  %v657_v24 = vld [vmem:[#allocation2 + $0x310] sm:$0xff] }
  0xe9   :  { %662 = vmatpush.msrb.mxu2 %v657_v24 }
  0xea   :  { %v154_v27 = vpop.f32.mrf.mxu0  ;;  %393 = vmatpush.msra.mxu3 %v366_v26 }
  0xeb   :  { %v155_v28 = vadd.f32 %v1132_v52, %v154_v27  ;;  %v365_v27 = vld [vmem:[#allocation2 + $0x1a8] sm:$0xff] }
  0xec   :  { %394 = vmatpush.msra.mxu3 %v365_v27 }
  0xed   :  { %236 = vmatmul.f32.gmra.mxu1 %v155_v28  ;;  %497 = vmatmul.f32.gmra.mxu0 %v155_v28 }
  0xee   :  { %395 = vmatpush.msra.mxu3 %v364_v29  ;;  %v1195_v29 = vld [vmem:[%s1300_s2 + $0x3] ss:$0 sm:$0xff] }
  0xf2   :  { %v157_v31 = vpop.f32.mrf.mxu0 }
  0xf3   :  { %v158_v32 = vadd.f32 %v1132_v52, %v157_v31 }
  0xf5   :  { %239 = vmatmul.f32.gmra.mxu1 %v158_v32  ;;  %500 = vmatmul.f32.gmra.mxu0 %v158_v32 }
  0xfa   :  { %v160_v33 = vpop.f32.mrf.mxu0 }
  0xfb   :  { %v161_v34 = vadd.f32 %v1132_v52, %v160_v33 }
  0xfd   :  { %242 = vmatmul.f32.gmra.mxu1 %v161_v34  ;;  %503 = vmatmul.f32.gmra.mxu0 %v161_v34 }
 0x102   :  { %v163_v35 = vpop.f32.mrf.mxu0 }
 0x103   :  { %v164_v36 = vadd.f32 %v1132_v52, %v163_v35  ;;  %v559_v35 = vld [vmem:[#allocation2 + $0x298] sm:$0xff] }
 0x104   :  { %562 = vmatpush.msrb.mxu1 %v559_v35 }
 0x105   :  { %245 = vmatmul.f32.gmra.mxu1 %v164_v36  ;;  %506 = vmatmul.f32.gmra.mxu0 %v164_v36 }
 0x10a   :  { %v201_v38 = vpop.f32.mrf.mxu1 }
 0x10b   :  { %v202_v39 = vadd.f32 %v1153_v37, %v201_v38 }
 0x10d   :  { %v249_v40 = vmax.f32 %v202_v39, 0.0 }
 0x10f   :  { %299 = vmatmul.f32.vlgmr.msra.gmra.mxu2 %v249_v40  ;;  %v558_v40 = vld [vmem:[#allocation2 + $0x290] sm:$0xff] }
 0x110   :  { %563 = vmatpush.msrb.mxu1 %v558_v40 }
 0x112   :  { %v204_v41 = vpop.f32.mrf.mxu1 }
 0x113   :  { %v205_v42 = vadd.f32 %v1153_v37, %v204_v41  ;;  %v557_v41 = vld [vmem:[#allocation2 + $0x288] sm:$0xff] }
 0x114   :  { %564 = vmatpush.msrb.mxu1 %v557_v41 }
 0x115   :  { %v250_v43 = vmax.f32 %v205_v42, 0.0  ;;  %v1174_v42 = vld [vmem:[%s1300_s2 + $0x2] ss:$0 sm:$0xff] }
 0x117   :  { %302 = vmatmul.f32.gmra.mxu2 %v250_v43 }
 0x11a   :  { %v207_v44 = vpop.f32.mrf.mxu1 }
 0x11b   :  { %v208_v45 = vadd.f32 %v1153_v37, %v207_v44 }
 0x11d   :  { %v251_v46 = vmax.f32 %v208_v45, 0.0  ;;  %v556_v45 = vld [vmem:[#allocation2 + $0x280] sm:$0xff] }
 0x11e   :  { %565 = vmatpush.msrb.mxu1 %v556_v45  ;;  %v653_v45 = vld [vmem:[#allocation2 + $0x2f0] sm:$0xff] }
 0x11f   :  { %305 = vmatmul.f32.gmra.mxu2 %v251_v46 }
 0x122   :  { %v210_v47 = vpop.f32.mrf.mxu1 }
 0x123   :  { %v211_v48 = vadd.f32 %v1153_v37, %v210_v47  ;;  %v555_v47 = vld [vmem:[#allocation2 + $0x278] sm:$0xff] }
 0x124   :  { %566 = vmatpush.msrb.mxu1 %v555_v47 }
 0x125   :  { %v252_v49 = vmax.f32 %v211_v48, 0.0 }
 0x127   :  { %308 = vmatmul.f32.gmra.mxu2 %v252_v49 }
 0x12a   :  { %v213_v50 = vpop.f32.mrf.mxu1 }
 0x12b   :  { %v214_v51 = vadd.f32 %v1153_v37, %v213_v50  ;;  %v554_v50 = vld [vmem:[#allocation2 + $0x270] sm:$0xff] }
 0x12c   :  { %567 = vmatpush.msrb.mxu1 %v554_v50  ;;  %v652_v50 = vld [vmem:[#allocation2 + $0x2e8] sm:$0xff] }
 0x12d   :  { %v253_v52 = vmax.f32 %v214_v51, 0.0 }
 0x12f   :  { %311 = vmatmul.f32.gmra.mxu2 %v253_v52 }
 0x132   :  { %v216_v53 = vpop.f32.mrf.mxu1 }
 0x133   :  { %v217_v54 = vadd.f32 %v1153_v37, %v216_v53  ;;  %v553_v53 = vld [vmem:[#allocation2 + $0x268] sm:$0xff] }
 0x134   :  { %568 = vmatpush.msrb.mxu1 %v553_v53 }
 0x135   :  { %v254_v55 = vmax.f32 %v217_v54, 0.0 }
 0x137   :  { %314 = vmatmul.f32.gmra.mxu2 %v254_v55 }
 0x13a   :  { %v219_v56 = vpop.f32.mrf.mxu1 }
 0x13b   :  { %v220_v57 = vadd.f32 %v1153_v37, %v219_v56  ;;  %v552_v56 = vld [vmem:[#allocation2 + $0x260] sm:$0xff] }
 0x13c   :  { %569 = vmatpush.msrb.mxu1 %v552_v56 }
 0x13d   :  { %v255_v58 = vmax.f32 %v220_v57, 0.0 }
 0x13f   :  { %317 = vmatmul.f32.gmra.mxu2 %v255_v58 }
 0x142   :  { %v222_v59 = vpop.f32.mrf.mxu1 }
 0x143   :  { %v223_v60 = vadd.f32 %v1153_v37, %v222_v59  ;;  %v551_v59 = vld [vmem:[#allocation2 + $0x258] sm:$0xff] }
 0x144   :  { %570 = vmatpush.msrb.mxu1 %v551_v59 }
 0x145   :  { %v256_v61 = vmax.f32 %v223_v60, 0.0 }
 0x147   :  { %320 = vmatmul.f32.gmra.mxu2 %v256_v61 }
 0x14a   :  { %v225_v62 = vpop.f32.mrf.mxu1 }
 0x14b   :  { %v226_v63 = vadd.f32 %v1153_v37, %v225_v62  ;;  %v550_v62 = vld [vmem:[#allocation2 + $0x250] sm:$0xff] }
 0x14c   :  { %571 = vmatpush.msrb.mxu1 %v550_v62 }
 0x14d   :  { %v257_v0 = vmax.f32 %v226_v63, 0.0 }
 0x14f   :  { %323 = vmatmul.f32.gmra.mxu2 %v257_v0 }
 0x152   :  { %v228_v1 = vpop.f32.mrf.mxu1 }
 0x153   :  { %v229_v2 = vadd.f32 %v1153_v37, %v228_v1  ;;  %v549_v1 = vld [vmem:[#allocation2 + $0x248] sm:$0xff] }
 0x154   :  { %572 = vmatpush.msrb.mxu1 %v549_v1 }
 0x155   :  { %v258_v3 = vmax.f32 %v229_v2, 0.0 }
 0x156   :  { %573 = vmatpush.msrb.mxu1 %v548_v4 }
 0x157   :  { %326 = vmatmul.f32.gmra.mxu2 %v258_v3 }
 0x15a   :  { %v231_v7 = vpop.f32.mrf.mxu1 }
 0x15b   :  { %v232_v8 = vadd.f32 %v1153_v37, %v231_v7  ;;  %v547_v7 = vld [vmem:[#allocation2 + $0x238] sm:$0xff] }
 0x15c   :  { %574 = vmatpush.msrb.mxu1 %v547_v7 }
 0x15d   :  { %v259_v10 = vmax.f32 %v232_v8, 0.0 }
 0x15f   :  { %329 = vmatmul.f32.gmra.mxu2 %v259_v10  ;;  %v546_v10 = vld [vmem:[#allocation2 + $0x230] sm:$0xff] }
 0x160   :  { %575 = vmatpush.msrb.mxu1 %v546_v10 }
 0x162   :  { %v234_v14 = vpop.f32.mrf.mxu1  ;;  %576 = vmatpush.msrb.mxu1 %v545_v13 }
 0x163   :  { %v235_v15 = vadd.f32 %v1153_v37, %v234_v14  ;;  %v544_v14 = vld [vmem:[#allocation2 + $0x220] sm:$0xff] }
 0x164   :  { %577 = vmatpush.msrb.mxu1 %v544_v14 }
 0x165   :  { %v260_v17 = vmax.f32 %v235_v15, 0.0 }
 0x167   :  { %332 = vmatmul.f32.gmra.mxu2 %v260_v17  ;;  %v462_v17 = vpop.f32.mrf.mxu0 }
 0x16a   :  { %v237_v22 = vpop.f32.mrf.mxu1 }
 0x16b   :  { %v238_v23 = vadd.f32 %v1153_v37, %v237_v22 }
 0x16d   :  { %v261_v25 = vmax.f32 %v238_v23, 0.0 }
 0x16f   :  { %335 = vmatmul.f32.gmra.mxu2 %v261_v25  ;;  %v465_v23 = vpop.f32.mrf.mxu0 }
 0x172   :  { %v240_v28 = vpop.f32.mrf.mxu1 }
 0x173   :  { %v241_v30 = vadd.f32 %v1153_v37, %v240_v28  ;;  %v656_v28 = vld [vmem:[#allocation2 + $0x308] sm:$0xff] }
 0x174   :  { %663 = vmatpush.msrb.mxu2 %v656_v28 }
 0x175   :  { %v262_v31 = vmax.f32 %v241_v30, 0.0 }
 0x177   :  { %338 = vmatmul.f32.gmra.mxu2 %v262_v31  ;;  %v468_v27 = vpop.f32.mrf.mxu0 }
 0x17a   :  { %v243_v32 = vpop.f32.mrf.mxu1 }
 0x17b   :  { %v244_v33 = vadd.f32 %v1153_v37, %v243_v32 }
 0x17d   :  { %v263_v34 = vmax.f32 %v244_v33, 0.0  ;;  %v655_v33 = vld [vmem:[#allocation2 + $0x300] sm:$0xff] }
 0x17e   :  { %664 = vmatpush.msrb.mxu2 %v655_v33 }
 0x17f   :  { %341 = vmatmul.f32.gmra.mxu2 %v263_v34  ;;  %v471_v30 = vpop.f32.mrf.mxu0 }
 0x182   :  { %v246_v36 = vpop.f32.mrf.mxu1 }
 0x183   :  { %v247_v38 = vadd.f32 %v1153_v37, %v246_v36 }
 0x185   :  { %v264_v39 = vmax.f32 %v247_v38, 0.0 }
 0x187   :  { %344 = vmatmul.f32.gmra.mxu2 %v264_v39  ;;  %v654_v39 = vld [vmem:[#allocation2 + $0x2f8] sm:$0xff]  ;;  %v474_v40 = vpop.f32.mrf.mxu0 }
 0x188   :  { %665 = vmatpush.msrb.mxu2 %v654_v39 }
 0x18a   :  { %666 = vmatpush.msrb.mxu2 %v653_v45 }
 0x18c   :  { %667 = vmatpush.msrb.mxu2 %v652_v50  ;;  %v757_v50 = vld [vmem:[#allocation2 + $0x398] sm:$0xff] }
 0x18d   :  { %760 = vmatpush.msrb.mxu3 %v757_v50 }
 0x192   :  { %v300_v43 = vpop.f32.mrf.mxu2 }
 0x193   :  { %v301_v44 = vadd.f32 %v1174_v42, %v300_v43 }
 0x195   :  { %396 = vmatmul.f32.vlgmr.msra.gmra.mxu3 %v301_v44 }
 0x19a   :  { %v303_v46 = vpop.f32.mrf.mxu2 }
 0x19b   :  { %v304_v37 = vadd.f32 %v1174_v42, %v303_v46 }
 0x19d   :  { %399 = vmatmul.f32.gmra.mxu3 %v304_v37  ;;  %v477_v37 = vpop.f32.mrf.mxu0 }
 0x1a2   :  { %v306_v48 = vpop.f32.mrf.mxu2 }
 0x1a3   :  { %v307_v49 = vadd.f32 %v1174_v42, %v306_v48 }
 0x1a5   :  { %402 = vmatmul.f32.gmra.mxu3 %v307_v49  ;;  %v480_v53 = vpop.f32.mrf.mxu0 }
 0x1aa   :  { %v309_v51 = vpop.f32.mrf.mxu2 }
 0x1ab   :  { %v310_v52 = vadd.f32 %v1174_v42, %v309_v51 }
 0x1ad   :  { %405 = vmatmul.f32.gmra.mxu3 %v310_v52  ;;  %v483_v59 = vpop.f32.mrf.mxu0 }
 0x1b2   :  { %v312_v54 = vpop.f32.mrf.mxu2 }
 0x1b3   :  { %v313_v55 = vadd.f32 %v1174_v42, %v312_v54 }
 0x1b5   :  { %408 = vmatmul.f32.gmra.mxu3 %v313_v55 }
 0x1ba   :  { %v315_v57 = vpop.f32.mrf.mxu2 }
 0x1bb   :  { %v316_v58 = vadd.f32 %v1174_v42, %v315_v57 }
 0x1bd   :  { %411 = vmatmul.f32.gmra.mxu3 %v316_v58  ;;  %v651_v58 = vld [vmem:[#allocation2 + $0x2e0] sm:$0xff] }
 0x1be   :  { %668 = vmatpush.msrb.mxu2 %v651_v58 }
 0x1c2   :  { %v318_v60 = vpop.f32.mrf.mxu2 }
 0x1c3   :  { %v319_v61 = vadd.f32 %v1174_v42, %v318_v60 }
 0x1c5   :  { %414 = vmatmul.f32.gmra.mxu3 %v319_v61 }
 0x1ca   :  { %v321_v63 = vpop.f32.mrf.mxu2 }
 0x1cb   :  { %v322_v0 = vadd.f32 %v1174_v42, %v321_v63 }
 0x1cd   :  { %417 = vmatmul.f32.gmra.mxu3 %v322_v0  ;;  %v650_v0 = vld [vmem:[#allocation2 + $0x2d8] sm:$0xff] }
 0x1ce   :  { %669 = vmatpush.msrb.mxu2 %v650_v0  ;;  %v754_v0 = vld [vmem:[#allocation2 + $0x380] sm:$0xff] }
 0x1d2   :  { %v324_v2 = vpop.f32.mrf.mxu2 }
 0x1d3   :  { %v325_v3 = vadd.f32 %v1174_v42, %v324_v2 }
 0x1d5   :  { %420 = vmatmul.f32.gmra.mxu3 %v325_v3  ;;  %v486_v3 = vpop.f32.mrf.mxu0 }
 0x1da   :  { %v327_v5 = vpop.f32.mrf.mxu2 }
 0x1db   :  { %v328_v6 = vadd.f32 %v1174_v42, %v327_v5 }
 0x1dd   :  { %423 = vmatmul.f32.gmra.mxu3 %v328_v6  ;;  %v649_v6 = vld [vmem:[#allocation2 + $0x2d0] sm:$0xff]  ;;  %v489_v10 = vpop.f32.mrf.mxu0 }
 0x1de   :  { %670 = vmatpush.msrb.mxu2 %v649_v6 }
 0x1e2   :  { %v330_v8 = vpop.f32.mrf.mxu2 }
 0x1e3   :  { %v331_v9 = vadd.f32 %v1174_v42, %v330_v8 }
 0x1e5   :  { %426 = vmatmul.f32.gmra.mxu3 %v331_v9 }
 0x1ea   :  { %v333_v11 = vpop.f32.mrf.mxu2 }
 0x1eb   :  { %v334_v12 = vadd.f32 %v1174_v42, %v333_v11 }
 0x1ed   :  { %429 = vmatmul.f32.gmra.mxu3 %v334_v12  ;;  %v648_v12 = vld [vmem:[#allocation2 + $0x2c8] sm:$0xff] }
 0x1ee   :  { %671 = vmatpush.msrb.mxu2 %v648_v12 }
 0x1f2   :  { %v336_v15 = vpop.f32.mrf.mxu2 }
 0x1f3   :  { %v337_v16 = vadd.f32 %v1174_v42, %v336_v15 }
 0x1f5   :  { %432 = vmatmul.f32.gmra.mxu3 %v337_v16 }
 0x1fa   :  { %v339_v18 = vpop.f32.mrf.mxu2 }
 0x1fb   :  { %v340_v19 = vadd.f32 %v1174_v42, %v339_v18  ;;  %v492_v18 = vpop.f32.mrf.mxu0 }
 0x1fd   :  { %435 = vmatmul.f32.gmra.mxu3 %v340_v19 }
 0x202   :  { %v342_v21 = vpop.f32.mrf.mxu2 }
 0x203   :  { %v343_v22 = vadd.f32 %v1174_v42, %v342_v21  ;;  %v495_v24 = vpop.f32.mrf.mxu0 }
 0x205   :  { %438 = vmatmul.f32.gmra.mxu3 %v343_v22 }
 0x20a   :  { %v345_v25 = vpop.f32.mrf.mxu2 }
 0x20b   :  { %v346_v26 = vadd.f32 %v1174_v42, %v345_v25  ;;  %v498_v33 = vpop.f32.mrf.mxu0 }
 0x20d   :  { %441 = vmatmul.f32.gmra.mxu3 %v346_v26 }
 0x218   :  { %v397_v31 = vpop.f32.mrf.mxu3 }
 0x219   :  { %v463_v32 = vadd.f32 %v462_v17, %v397_v31  ;;  %v647_v17 = vld [vmem:[#allocation2 + $0x2c0] sm:$0xff] }
 0x21a   :  { %672 = vmatpush.msrb.mxu2 %v647_v17 }
 0x21b   :  { %v512_v34 = vadd.f32 %v1195_v29, %v463_v32 }
 0x21d   :  { %v528_v35 = vmax.f32 %v512_v34, 0.0 }
 0x21f   :  { %578 = vmatmul.f32.vlgmr.msrb.gmra.mxu1 %v528_v35 }
 0x220   :  { %v400_v36 = vpop.f32.mrf.mxu3 }
 0x221   :  { %v466_v38 = vadd.f32 %v465_v23, %v400_v36  ;;  %v646_v23 = vld [vmem:[#allocation2 + $0x2b8] sm:$0xff]  ;;  %v644_v36 = vld [vmem:[#allocation2 + $0x2a8] sm:$0xff] }
 0x222   :  { %673 = vmatpush.msrb.mxu2 %v646_v23  ;;  %v748_v23 = vld [vmem:[#allocation2 + $0x350] sm:$0xff] }
 0x223   :  { %v513_v41 = vadd.f32 %v1195_v29, %v466_v38  ;;  %v643_v38 = vld [vmem:[#allocation2 + $0x2a0] sm:$0xff] }
 0x225   :  { %v529_v42 = vmax.f32 %v513_v41, 0.0 }
 0x227   :  { %581 = vmatmul.f32.gmra.mxu1 %v529_v42  ;;  %v501_v42 = vpop.f32.mrf.mxu0 }
 0x228   :  { %v403_v43 = vpop.f32.mrf.mxu3 }
 0x229   :  { %v469_v44 = vadd.f32 %v468_v27, %v403_v43 }
 0x22b   :  { %v514_v46 = vadd.f32 %v1195_v29, %v469_v44 }
 0x22d   :  { %v530_v47 = vmax.f32 %v514_v46, 0.0 }
 0x22f   :  { %584 = vmatmul.f32.gmra.mxu1 %v530_v47  ;;  %v504_v47 = vpop.f32.mrf.mxu0 }
 0x230   :  { %v406_v48 = vpop.f32.mrf.mxu3 }
 0x231   :  { %v472_v49 = vadd.f32 %v471_v30, %v406_v48  ;;  %v645_v30 = vld [vmem:[#allocation2 + $0x2b0] sm:$0xff] }
 0x232   :  { %674 = vmatpush.msrb.mxu2 %v645_v30 }
 0x233   :  { %v515_v51 = vadd.f32 %v1195_v29, %v472_v49 }
 0x234   :  { %675 = vmatpush.msrb.mxu2 %v644_v36  ;;  %v745_v36 = vld [vmem:[#allocation2 + $0x338] sm:$0xff] }
 0x235   :  { %v531_v52 = vmax.f32 %v515_v51, 0.0 }
 0x236   :  { %676 = vmatpush.msrb.mxu2 %v643_v38 }
 0x237   :  { %587 = vmatmul.f32.gmra.mxu1 %v531_v52 }
 0x238   :  { %v409_v54 = vpop.f32.mrf.mxu3 }
 0x239   :  { %v475_v55 = vadd.f32 %v474_v40, %v409_v54 }
 0x23b   :  { %v516_v56 = vadd.f32 %v1195_v29, %v475_v55 }
 0x23d   :  { %v532_v57 = vmax.f32 %v516_v56, 0.0  ;;  %v756_v56 = vld [vmem:[#allocation2 + $0x390] sm:$0xff] }
 0x23e   :  { %761 = vmatpush.msrb.mxu3 %v756_v56 }
 0x23f   :  { %590 = vmatmul.f32.gmra.mxu1 %v532_v57 }
 0x240   :  { %v412_v60 = vpop.f32.mrf.mxu3 }
 0x241   :  { %v478_v61 = vadd.f32 %v477_v37, %v412_v60  ;;  %v755_v60 = vld [vmem:[#allocation2 + $0x388] sm:$0xff] }
 0x242   :  { %762 = vmatpush.msrb.mxu3 %v755_v60 }
 0x243   :  { %v517_v62 = vadd.f32 %v1195_v29, %v478_v61 }
 0x244   :  { %763 = vmatpush.msrb.mxu3 %v754_v0 }
 0x245   :  { %v533_v63 = vmax.f32 %v517_v62, 0.0 }
 0x247   :  { %593 = vmatmul.f32.gmra.mxu1 %v533_v63 }
 0x248   :  { %v415_v1 = vpop.f32.mrf.mxu3 }
 0x249   :  { %v481_v2 = vadd.f32 %v480_v53, %v415_v1  ;;  %v507_v53 = vpop.f32.mrf.mxu0 }
 0x24b   :  { %v518_v4 = vadd.f32 %v1195_v29, %v481_v2 }
 0x24d   :  { %v534_v5 = vmax.f32 %v518_v4, 0.0 }
 0x24f   :  { %596 = vmatmul.f32.gmra.mxu1 %v534_v5 }
 0x250   :  { %v418_v7 = vpop.f32.mrf.mxu3 }
 0x251   :  { %v484_v8 = vadd.f32 %v483_v59, %v418_v7  ;;  %v1216_v59 = vld [vmem:[%s1300_s2 + $0x4] ss:$0 sm:$0xff]  ;;  %v752_v7 = vld [vmem:[#allocation2 + $0x370] sm:$0xff] }
 0x253   :  { %v519_v9 = vadd.f32 %v1195_v29, %v484_v8 }
 0x255   :  { %v535_v11 = vmax.f32 %v519_v9, 0.0 }
 0x257   :  { %599 = vmatmul.f32.gmra.mxu1 %v535_v11  ;;  %v751_v11 = vld [vmem:[#allocation2 + $0x368] sm:$0xff] }
 0x258   :  { %v421_v13 = vpop.f32.mrf.mxu3 }
 0x259   :  { %v487_v14 = vadd.f32 %v486_v3, %v421_v13  ;;  %v753_v3 = vld [vmem:[#allocation2 + $0x378] sm:$0xff] }
 0x25a   :  { %764 = vmatpush.msrb.mxu3 %v753_v3 }
 0x25b   :  { %v520_v15 = vadd.f32 %v1195_v29, %v487_v14 }
 0x25c   :  { %765 = vmatpush.msrb.mxu3 %v752_v7 }
 0x25d   :  { %v536_v16 = vmax.f32 %v520_v15, 0.0  ;;  %v750_v15 = vld [vmem:[#allocation2 + $0x360] sm:$0xff] }
 0x25e   :  { %766 = vmatpush.msrb.mxu3 %v751_v11 }
 0x25f   :  { %602 = vmatmul.f32.gmra.mxu1 %v536_v16 }
 0x260   :  { %v424_v19 = vpop.f32.mrf.mxu3  ;;  %767 = vmatpush.msrb.mxu3 %v750_v15 }
 0x261   :  { %v490_v20 = vadd.f32 %v489_v10, %v424_v19  ;;  %v749_v19 = vld [vmem:[#allocation2 + $0x358] sm:$0xff] }
 0x262   :  { %768 = vmatpush.msrb.mxu3 %v749_v19 }
 0x263   :  { %v521_v21 = vadd.f32 %v1195_v29, %v490_v20 }
 0x264   :  { %769 = vmatpush.msrb.mxu3 %v748_v23 }
 0x265   :  { %v537_v22 = vmax.f32 %v521_v21, 0.0 }
 0x267   :  { %605 = vmatmul.f32.gmra.mxu1 %v537_v22 }
 0x268   :  { %v427_v25 = vpop.f32.mrf.mxu3 }
 0x269   :  { %v493_v26 = vadd.f32 %v492_v18, %v427_v25 }
 0x26b   :  { %v522_v27 = vadd.f32 %v1195_v29, %v493_v26 }
 0x26d   :  { %v538_v28 = vmax.f32 %v522_v27, 0.0  ;;  %v747_v27 = vld [vmem:[#allocation2 + $0x348] sm:$0xff] }
 0x26e   :  { %770 = vmatpush.msrb.mxu3 %v747_v27 }
 0x26f   :  { %608 = vmatmul.f32.gmra.mxu1 %v538_v28 }
 0x270   :  { %v430_v31 = vpop.f32.mrf.mxu3 }
 0x271   :  { %v496_v32 = vadd.f32 %v495_v24, %v430_v31 }
 0x273   :  { %v523_v34 = vadd.f32 %v1195_v29, %v496_v32  ;;  %v746_v32 = vld [vmem:[#allocation2 + $0x340] sm:$0xff] }
 0x274   :  { %771 = vmatpush.msrb.mxu3 %v746_v32 }
 0x275   :  { %v539_v35 = vmax.f32 %v523_v34, 0.0 }
 0x276   :  { %772 = vmatpush.msrb.mxu3 %v745_v36 }
 0x277   :  { %611 = vmatmul.f32.gmra.mxu1 %v539_v35 }
 0x278   :  { %v433_v39 = vpop.f32.mrf.mxu3 }
 0x279   :  { %v499_v40 = vadd.f32 %v498_v33, %v433_v39 }
 0x27b   :  { %v524_v41 = vadd.f32 %v1195_v29, %v499_v40 }
 0x27d   :  { %v540_v43 = vmax.f32 %v524_v41, 0.0  ;;  %v744_v41 = vld [vmem:[#allocation2 + $0x330] sm:$0xff] }
 0x27e   :  { %773 = vmatpush.msrb.mxu3 %v744_v41 }
 0x27f   :  { %614 = vmatmul.f32.gmra.mxu1 %v540_v43 }
 0x280   :  { %v436_v44 = vpop.f32.mrf.mxu3 }
 0x281   :  { %v502_v45 = vadd.f32 %v501_v42, %v436_v44 }
 0x283   :  { %v525_v46 = vadd.f32 %v1195_v29, %v502_v45  ;;  %v743_v45 = vld [vmem:[#allocation2 + $0x328] sm:$0xff] }
 0x284   :  { %774 = vmatpush.msrb.mxu3 %v743_v45 }
 0x285   :  { %v541_v37 = vmax.f32 %v525_v46, 0.0  ;;  %v742_v46 = vld [vmem:[#allocation2 + $0x320] sm:$0xff] }
 0x286   :  { %775 = vmatpush.msrb.mxu3 %v742_v46 }
 0x287   :  { %617 = vmatmul.f32.gmra.mxu1 %v541_v37 }
 0x288   :  { %v439_v48 = vpop.f32.mrf.mxu3 }
 0x289   :  { %v505_v49 = vadd.f32 %v504_v47, %v439_v48 }
 0x28b   :  { %v526_v51 = vadd.f32 %v1195_v29, %v505_v49 }
 0x28d   :  { %v542_v52 = vmax.f32 %v526_v51, 0.0 }
 0x28f   :  { %620 = vmatmul.f32.gmra.mxu1 %v542_v52 }
 0x290   :  { %v442_v54 = vpop.f32.mrf.mxu3 }
 0x291   :  { %v508_v55 = vadd.f32 %v507_v53, %v442_v54 }
 0x293   :  { %v527_v57 = vadd.f32 %v1195_v29, %v508_v55 }
 0x295   :  { %v543_v58 = vmax.f32 %v527_v57, 0.0 }
 0x297   :  { %623 = vmatmul.f32.gmra.mxu1 %v543_v58  ;;  %v1008_v58 = vld [vmem:[%s1300_s2 + $0x5] ss:$0 sm:$0xff] }
 0x29c   :  { %v579_v61 = vpop.f32.mrf.mxu1 }
 0x29d   :  { %v580_v62 = vadd.f32 %v1216_v59, %v579_v61 }
 0x29f   :  { %v627_v63 = vmax.f32 %v580_v62, 0.0 }
 0x2a1   :  { %677 = vmatmul.f32.vlgmr.msrb.gmra.mxu2 %v627_v63 }
 0x2a4   :  { %v582_v1 = vpop.f32.mrf.mxu1 }
 0x2a5   :  { %v583_v2 = vadd.f32 %v1216_v59, %v582_v1 }
 0x2a7   :  { %v628_v29 = vmax.f32 %v583_v2, 0.0 }
 0x2a9   :  { %680 = vmatmul.f32.gmra.mxu2 %v628_v29 }
 0x2ac   :  { %v585_v4 = vpop.f32.mrf.mxu1 }
 0x2ad   :  { %v586_v5 = vadd.f32 %v1216_v59, %v585_v4 }
 0x2af   :  { %v629_v6 = vmax.f32 %v586_v5, 0.0 }
 0x2b1   :  { %683 = vmatmul.f32.gmra.mxu2 %v629_v6 }
 0x2b4   :  { %v588_v8 = vpop.f32.mrf.mxu1 }
 0x2b5   :  { %v589_v9 = vadd.f32 %v1216_v59, %v588_v8 }
 0x2b7   :  { %v630_v10 = vmax.f32 %v589_v9, 0.0 }
 0x2b9   :  { %686 = vmatmul.f32.gmra.mxu2 %v630_v10 }
 0x2bc   :  { %v591_v12 = vpop.f32.mrf.mxu1 }
 0x2bd   :  { %v592_v13 = vadd.f32 %v1216_v59, %v591_v12 }
 0x2bf   :  { %v631_v14 = vmax.f32 %v592_v13, 0.0 }
 0x2c1   :  { %689 = vmatmul.f32.gmra.mxu2 %v631_v14 }
 0x2c4   :  { %v594_v16 = vpop.f32.mrf.mxu1 }
 0x2c5   :  { %v595_v17 = vadd.f32 %v1216_v59, %v594_v16 }
 0x2c7   :  { %v632_v18 = vmax.f32 %v595_v17, 0.0 }
 0x2c9   :  { %692 = vmatmul.f32.gmra.mxu2 %v632_v18 }
 0x2cc   :  { %v597_v20 = vpop.f32.mrf.mxu1 }
 0x2cd   :  { %v598_v21 = vadd.f32 %v1216_v59, %v597_v20 }
 0x2cf   :  { %v633_v22 = vmax.f32 %v598_v21, 0.0 }
 0x2d1   :  { %695 = vmatmul.f32.gmra.mxu2 %v633_v22 }
 0x2d4   :  { %v600_v24 = vpop.f32.mrf.mxu1 }
 0x2d5   :  { %v601_v25 = vadd.f32 %v1216_v59, %v600_v24 }
 0x2d7   :  { %v634_v26 = vmax.f32 %v601_v25, 0.0 }
 0x2d9   :  { %698 = vmatmul.f32.gmra.mxu2 %v634_v26 }
 0x2dc   :  { %v603_v28 = vpop.f32.mrf.mxu1 }
 0x2dd   :  { %v604_v30 = vadd.f32 %v1216_v59, %v603_v28 }
 0x2df   :  { %v635_v31 = vmax.f32 %v604_v30, 0.0 }
 0x2e1   :  { %701 = vmatmul.f32.gmra.mxu2 %v635_v31 }
 0x2e4   :  { %v606_v33 = vpop.f32.mrf.mxu1 }
 0x2e5   :  { %v607_v34 = vadd.f32 %v1216_v59, %v606_v33 }
 0x2e7   :  { %v636_v35 = vmax.f32 %v607_v34, 0.0 }
 0x2e9   :  { %704 = vmatmul.f32.gmra.mxu2 %v636_v35 }
 0x2ec   :  { %v609_v38 = vpop.f32.mrf.mxu1 }
 0x2ed   :  { %v610_v39 = vadd.f32 %v1216_v59, %v609_v38 }
 0x2ef   :  { %v637_v40 = vmax.f32 %v610_v39, 0.0 }
 0x2f1   :  { %707 = vmatmul.f32.gmra.mxu2 %v637_v40 }
 0x2f4   :  { %v612_v42 = vpop.f32.mrf.mxu1 }
 0x2f5   :  { %v613_v43 = vadd.f32 %v1216_v59, %v612_v42 }
 0x2f7   :  { %v638_v44 = vmax.f32 %v613_v43, 0.0 }
 0x2f9   :  { %710 = vmatmul.f32.gmra.mxu2 %v638_v44  ;;  %v859_v44 = vlaneseq }
 0x2fb   :  { %v860_v46 = vshrl.u32 %v859_v44, 7 }
 0x2fc   :  { %v615_v37 = vpop.f32.mrf.mxu1 }
 0x2fd   :  { %v616_v47 = vadd.f32 %v1216_v59, %v615_v37  ;;  %v1240_v37 = vld [vmem:[%s1300_s2 + $0x6] ss:$0 sm:$0xff] }
 0x2ff   :  { %v639_v48 = vmax.f32 %v616_v47, 0.0  ;;  %v861_v47 = vadd.s32 8, %v860_v46 }
 0x301   :  { %713 = vmatmul.f32.gmra.mxu2 %v639_v48  ;;  %vm863_vm1 = vcmp.lt.s32.totalorder %v861_v47, 10 }
 0x304   :  { %v618_v49 = vpop.f32.mrf.mxu1 }
 0x305   :  { %v619_v50 = vadd.f32 %v1216_v59, %v618_v49 }
 0x307   :  { %v640_v51 = vmax.f32 %v619_v50, 0.0 }
 0x309   :  { %716 = vmatmul.f32.gmra.mxu2 %v640_v51 }
 0x30c   :  { %v621_v52 = vpop.f32.mrf.mxu1 }
 0x30d   :  { %v622_v53 = vadd.f32 %v1216_v59, %v621_v52  ;;  %v1247_v52 = vld [vmem:[%s1300_s2 + $0x7] ss:$0 sm:$0xff]  ;;  %s1041_s2 = smov 64  }
 0x30f   :  { %v641_v54 = vmax.f32 %v622_v53, 0.0 }
 0x311   :  { %719 = vmatmul.f32.gmra.mxu2 %v641_v54  ;;  %v1040_v54 = vmov 0.0  }
 0x314   :  { %v624_v55 = vpop.f32.mrf.mxu1 }
 0x315   :  { %v625_v56 = vadd.f32 %v1216_v59, %v624_v55  ;;  %v1249_v55 = vsel %vm863_vm1, 1.0, %v1040_v54 }
 0x317   :  { %v642_v57 = vmax.f32 %v625_v56, 0.0 }
 0x319   :  { %722 = vmatmul.f32.gmra.mxu2 %v642_v57 }
 0x324   :  { %v678_v60 = vpop.f32.mrf.mxu2 }
 0x325   :  { %v679_v61 = vadd.f32 %v1008_v58, %v678_v60 }
 0x327   :  { %v726_v62 = vmax.f32 %v679_v61, 0.0 }
 0x329   :  { %776 = vmatmul.f32.vlgmr.msrb.gmra.mxu3 %v726_v62 }
 0x32c   :  { %v681_v63 = vpop.f32.mrf.mxu2 }
 0x32d   :  { %v682_v0 = vadd.f32 %v1008_v58, %v681_v63 }
 0x32f   :  { %v727_v1 = vmax.f32 %v682_v0, 0.0 }
 0x331   :  { %779 = vmatmul.f32.gmra.mxu3 %v727_v1 }
 0x334   :  { %v684_v2 = vpop.f32.mrf.mxu2 }
 0x335   :  { %v685_v29 = vadd.f32 %v1008_v58, %v684_v2 }
 0x337   :  { %v728_v3 = vmax.f32 %v685_v29, 0.0 }
 0x339   :  { %782 = vmatmul.f32.gmra.mxu3 %v728_v3 }
 0x33c   :  { %v687_v4 = vpop.f32.mrf.mxu2 }
 0x33d   :  { %v688_v59 = vadd.f32 %v1008_v58, %v687_v4 }
 0x33f   :  { %v729_v5 = vmax.f32 %v688_v59, 0.0 }
 0x341   :  { %785 = vmatmul.f32.gmra.mxu3 %v729_v5 }
 0x344   :  { %v690_v6 = vpop.f32.mrf.mxu2 }
 0x345   :  { %v691_v7 = vadd.f32 %v1008_v58, %v690_v6 }
 0x347   :  { %v730_v8 = vmax.f32 %v691_v7, 0.0 }
 0x349   :  { %788 = vmatmul.f32.gmra.mxu3 %v730_v8 }
 0x34c   :  { %v693_v9 = vpop.f32.mrf.mxu2 }
 0x34d   :  { %v694_v10 = vadd.f32 %v1008_v58, %v693_v9 }
 0x34f   :  { %v731_v11 = vmax.f32 %v694_v10, 0.0 }
 0x351   :  { %791 = vmatmul.f32.gmra.mxu3 %v731_v11 }
 0x354   :  { %v696_v12 = vpop.f32.mrf.mxu2 }
 0x355   :  { %v697_v13 = vadd.f32 %v1008_v58, %v696_v12 }
 0x357   :  { %v732_v14 = vmax.f32 %v697_v13, 0.0 }
 0x359   :  { %794 = vmatmul.f32.gmra.mxu3 %v732_v14 }
 0x35c   :  { %v699_v15 = vpop.f32.mrf.mxu2 }
 0x35d   :  { %v700_v16 = vadd.f32 %v1008_v58, %v699_v15 }
 0x35f   :  { %v733_v17 = vmax.f32 %v700_v16, 0.0 }
 0x361   :  { %797 = vmatmul.f32.gmra.mxu3 %v733_v17 }
 0x364   :  { %v702_v18 = vpop.f32.mrf.mxu2 }
 0x365   :  { %v703_v19 = vadd.f32 %v1008_v58, %v702_v18 }
 0x367   :  { %v734_v20 = vmax.f32 %v703_v19, 0.0 }
 0x369   :  { %800 = vmatmul.f32.gmra.mxu3 %v734_v20 }
 0x36c   :  { %v705_v21 = vpop.f32.mrf.mxu2 }
 0x36d   :  { %v706_v22 = vadd.f32 %v1008_v58, %v705_v21 }
 0x36f   :  { %v735_v23 = vmax.f32 %v706_v22, 0.0 }
 0x371   :  { %803 = vmatmul.f32.gmra.mxu3 %v735_v23 }
 0x374   :  { %v708_v24 = vpop.f32.mrf.mxu2 }
 0x375   :  { %v709_v25 = vadd.f32 %v1008_v58, %v708_v24 }
 0x377   :  { %v736_v26 = vmax.f32 %v709_v25, 0.0 }
 0x379   :  { %806 = vmatmul.f32.gmra.mxu3 %v736_v26 }
 0x37c   :  { %v711_v27 = vpop.f32.mrf.mxu2 }
 0x37d   :  { %v712_v28 = vadd.f32 %v1008_v58, %v711_v27 }
 0x37f   :  { %v737_v30 = vmax.f32 %v712_v28, 0.0 }
 0x381   :  { %809 = vmatmul.f32.gmra.mxu3 %v737_v30 }
 0x384   :  { %v714_v31 = vpop.f32.mrf.mxu2 }
 0x385   :  { %v715_v32 = vadd.f32 %v1008_v58, %v714_v31 }
 0x387   :  { %v738_v33 = vmax.f32 %v715_v32, 0.0 }
 0x389   :  { %812 = vmatmul.f32.gmra.mxu3 %v738_v33 }
 0x38c   :  { %v717_v34 = vpop.f32.mrf.mxu2 }
 0x38d   :  { %v718_v35 = vadd.f32 %v1008_v58, %v717_v34 }
 0x38f   :  { %v739_v36 = vmax.f32 %v718_v35, 0.0 }
 0x391   :  { %815 = vmatmul.f32.gmra.mxu3 %v739_v36 }
 0x394   :  { %v720_v38 = vpop.f32.mrf.mxu2 }
 0x395   :  { %v721_v39 = vadd.f32 %v1008_v58, %v720_v38 }
 0x397   :  { %v740_v40 = vmax.f32 %v721_v39, 0.0 }
 0x399   :  { %818 = vmatmul.f32.gmra.mxu3 %v740_v40 }
 0x39c   :  { %v723_v41 = vpop.f32.mrf.mxu2 }
 0x39d   :  { %v724_v42 = vadd.f32 %v1008_v58, %v723_v41 }
 0x39f   :  { %v741_v43 = vmax.f32 %v724_v42, 0.0 }
 0x3a1   :  { %821 = vmatmul.f32.gmra.mxu3 %v741_v43 }
 0x3ac   :  { %v777_v45 = vpop.f32.mrf.mxu3 }
 0x3ad   :  { %v778_v48 = vadd.f32 %v1240_v37, %v777_v45 }
 0x3af   :  { %v825_v51 = vmax.f32 %v778_v48, 0.0 }
 0x3b1   :  { %v843_v57 = vmul.f32 %v1247_v52, %v825_v51 }
 0x3b4   :  { %v780_v49 = vpop.f32.mrf.mxu3 }
 0x3b5   :  { %v781_v50 = vadd.f32 %v1240_v37, %v780_v49 }
 0x3b7   :  { %v826_v53 = vmax.f32 %v781_v50, 0.0 }
 0x3b9   :  { %v844_v56 = vmul.f32 %v1247_v52, %v826_v53 }
 0x3bb   :  { %v869_v58 = vmul.f32 %v1249_v55, %v844_v56 }
 0x3bc   :  { %v783_v60 = vpop.f32.mrf.mxu3 }
 0x3bd   :  { %v884_v61 = vadd.f32 %v869_v58, %v843_v57  ;;  %v784_v62 = vadd.f32 %v1240_v37, %v783_v60 }
 0x3bf   :  { %v885_v0 = vrot.slane %v884_v61, 4  ;;  %v827_v2 = vmax.f32 %v784_v62, 0.0 }
 0x3c1   :  { %v886_v3 = vadd.f32 %v885_v0, %v884_v61  ;;  %v845_v59 = vmul.f32 %v1247_v52, %v827_v2 }
 0x3c3   :  { %v887_v7 = vrot.slane %v886_v3, 2 }
 0x3c4   :  { %v786_v63 = vpop.f32.mrf.mxu3 }
 0x3c5   :  { %v787_v1 = vadd.f32 %v1240_v37, %v786_v63  ;;  %v888_v10 = vadd.f32 %v887_v7, %v886_v3 }
 0x3c7   :  { %v828_v29 = vmax.f32 %v787_v1, 0.0  ;;  %v889_v15 = vrot.slane %v888_v10, 1 }
 0x3c9   :  { %v846_v4 = vmul.f32 %v1247_v52, %v828_v29  ;;  %v890_v21 = vadd.f32 %v889_v15, %v888_v10 }
 0x3cb   :  { %v871_v5 = vmul.f32 %v1249_v55, %v846_v4 }
 0x3cc   :  { %v789_v6 = vpop.f32.mrf.mxu3 }
 0x3cd   :  { %v891_v8 = vadd.f32 %v871_v5, %v845_v59  ;;  %v790_v13 = vadd.f32 %v1240_v37, %v789_v6 }
 0x3cf   :  { %v892_v9 = vrot.slane %v891_v8, 4  ;;  %v829_v19 = vmax.f32 %v790_v13, 0.0 }
 0x3d1   :  { %v893_v11 = vadd.f32 %v892_v9, %v891_v8  ;;  %v847_v24 = vmul.f32 %v1247_v52, %v829_v19 }
 0x3d3   :  { %v894_v12 = vrot.slane %v893_v11, 2 }
 0x3d4   :  { %v792_v14 = vpop.f32.mrf.mxu3 }
 0x3d5   :  { %v895_v16 = vadd.f32 %v894_v12, %v893_v11  ;;  %v793_v17 = vadd.f32 %v1240_v37, %v792_v14 }
 0x3d7   :  { %v896_v18 = vrot.slane %v895_v16, 1  ;;  %v830_v20 = vmax.f32 %v793_v17, 0.0 }
 0x3d9   :  { %v897_v22 = vadd.f32 %v896_v18, %v895_v16  ;;  %v848_v23 = vmul.f32 %v1247_v52, %v830_v20 }
 0x3db   :  { %v873_v25 = vmul.f32 %v1249_v55, %v848_v23  ;;  %v949_v26 = vsel %vm948_vm2, %v897_v22, %v890_v21 }
 0x3dc   :  { %v795_v27 = vpop.f32.mrf.mxu3 }
 0x3dd   :  { %v898_v28 = vadd.f32 %v873_v25, %v847_v24  ;;  %v796_v33 = vadd.f32 %v1240_v37, %v795_v27 }
 0x3df   :  { %v899_v30 = vrot.slane %v898_v28, 4  ;;  %v831_v39 = vmax.f32 %v796_v33, 0.0 }
 0x3e1   :  { %v900_v31 = vadd.f32 %v899_v30, %v898_v28  ;;  %v849_v43 = vmul.f32 %v1247_v52, %v831_v39 }
 0x3e3   :  { %v901_v32 = vrot.slane %v900_v31, 2 }
 0x3e4   :  { %v798_v34 = vpop.f32.mrf.mxu3 }
 0x3e5   :  { %v902_v35 = vadd.f32 %v901_v32, %v900_v31  ;;  %v799_v36 = vadd.f32 %v1240_v37, %v798_v34 }
 0x3e7   :  { %v903_v38 = vrot.slane %v902_v35, 1  ;;  %v832_v40 = vmax.f32 %v799_v36, 0.0 }
 0x3e9   :  { %v904_v41 = vadd.f32 %v903_v38, %v902_v35  ;;  %v850_v42 = vmul.f32 %v1247_v52, %v832_v40 }
 0x3eb   :  { %v875_v44 = vmul.f32 %v1249_v55, %v850_v42  ;;  %v951_v45 = vsel %vm950_vm3, %v904_v41, %v949_v26 }
 0x3ec   :  { %v801_v46 = vpop.f32.mrf.mxu3 }
 0x3ed   :  { %v905_v47 = vadd.f32 %v875_v44, %v849_v43  ;;  %v802_v2 = vadd.f32 %v1240_v37, %v801_v46 }
 0x3ef   :  { %v906_v48 = vrot.slane %v905_v47, 4  ;;  %v833_v7 = vmax.f32 %v802_v2, 0.0 }
 0x3f1   :  { %v907_v49 = vadd.f32 %v906_v48, %v905_v47  ;;  %v851_v14 = vmul.f32 %v1247_v52, %v833_v7 }
 0x3f3   :  { %v908_v50 = vrot.slane %v907_v49, 2 }
 0x3f4   :  { %v804_v51 = vpop.f32.mrf.mxu3 }
 0x3f5   :  { %v909_v53 = vadd.f32 %v908_v50, %v907_v49  ;;  %v805_v61 = vadd.f32 %v1240_v37, %v804_v51 }
 0x3f7   :  { %v910_v54 = vrot.slane %v909_v53, 1  ;;  %v834_v0 = vmax.f32 %v805_v61, 0.0 }
 0x3f9   :  { %v911_v56 = vadd.f32 %v910_v54, %v909_v53  ;;  %v852_v3 = vmul.f32 %v1247_v52, %v834_v0 }
 0x3fb   :  { %v1269_v57 = vsel %vm952_vm4, %v911_v56, %v951_v45  ;;  %v877_v10 = vmul.f32 %v1249_v55, %v852_v3 }
 0x3fc   :  { %v807_v58 = vpop.f32.mrf.mxu3 }
 0x3fd   :  { %v808_v29 = vadd.f32 %v1240_v37, %v807_v58  ;;  %v912_v17 = vadd.f32 %v877_v10, %v851_v14 }
 0x3ff   :  { %v835_v8 = vmax.f32 %v808_v29, 0.0  ;;  %v913_v22 = vrot.slane %v912_v17, 4 }
 0x401   :  { %v853_v15 = vmul.f32 %v1247_v52, %v835_v8  ;;  %v914_v26 = vadd.f32 %v913_v22, %v912_v17 }
 0x403   :  { %v915_v34 = vrot.slane %v914_v26, 2 }
 0x404   :  { %v810_v60 = vpop.f32.mrf.mxu3 }
 0x405   :  { %v811_v63 = vadd.f32 %v1240_v37, %v810_v60  ;;  %v916_v41 = vadd.f32 %v915_v34, %v914_v26 }
 0x407   :  { %v836_v1 = vmax.f32 %v811_v63, 0.0  ;;  %v917_v46 = vrot.slane %v916_v41, 1 }
 0x409   :  { %v854_v5 = vmul.f32 %v1247_v52, %v836_v1  ;;  %v918_v50 = vadd.f32 %v917_v46, %v916_v41 }
 0x40b   :  { %v879_v12 = vmul.f32 %v1249_v55, %v854_v5 }
 0x40c   :  { %v813_v62 = vpop.f32.mrf.mxu3 }
 0x40d   :  { %v814_v4 = vadd.f32 %v1240_v37, %v813_v62  ;;  %v919_v20 = vadd.f32 %v879_v12, %v853_v15 }
 0x40f   :  { %v837_v11 = vmax.f32 %v814_v4, 0.0  ;;  %v920_v23 = vrot.slane %v919_v20, 4 }
 0x411   :  { %v855_v18 = vmul.f32 %v1247_v52, %v837_v11  ;;  %v921_v28 = vadd.f32 %v920_v23, %v919_v20 }
 0x413   :  { %v922_v35 = vrot.slane %v921_v28, 2 }
 0x414   :  { %v816_v59 = vpop.f32.mrf.mxu3 }
 0x415   :  { %v817_v6 = vadd.f32 %v1240_v37, %v816_v59  ;;  %v923_v42 = vadd.f32 %v922_v35, %v921_v28 }
 0x417   :  { %v838_v9 = vmax.f32 %v817_v6, 0.0  ;;  %v924_v47 = vrot.slane %v923_v42, 1 }
 0x419   :  { %v856_v13 = vmul.f32 %v1247_v52, %v838_v9  ;;  %v925_v51 = vadd.f32 %v924_v47, %v923_v42 }
 0x41b   :  { %v881_v16 = vmul.f32 %v1249_v55, %v856_v13 }
 0x41c   :  { %v819_v19 = vpop.f32.mrf.mxu3 }
 0x41d   :  { %v926_v21 = vadd.f32 %v881_v16, %v855_v18  ;;  %v820_v25 = vadd.f32 %v1240_v37, %v819_v19 }
 0x41f   :  { %v927_v24 = vrot.slane %v926_v21, 4  ;;  %v839_v32 = vmax.f32 %v820_v25, 0.0 }
 0x421   :  { %v928_v31 = vadd.f32 %v927_v24, %v926_v21  ;;  %v857_v39 = vmul.f32 %v1247_v52, %v839_v32 }
 0x423   :  { %v929_v38 = vrot.slane %v928_v31, 2 }
 0x424   :  { %v822_v27 = vpop.f32.mrf.mxu3 }
 0x425   :  { %v823_v30 = vadd.f32 %v1240_v37, %v822_v27  ;;  %v930_v44 = vadd.f32 %v929_v38, %v928_v31 }
 0x427   :  { %v840_v33 = vmax.f32 %v823_v30, 0.0  ;;  %v931_v48 = vrot.slane %v930_v44, 1 }
 0x429   :  { %v858_v36 = vmul.f32 %v1247_v52, %v840_v33  ;;  %v932_v54 = vadd.f32 %v931_v48, %v930_v44  ;;  %v955_v52 = vsel %vm954_vm5, %v918_v50, %v1269_v57 }
 0x42a   :  { %v957_v58 = vsel %vm956_vm6, %v925_v51, %v955_v52 }
 0x42b   :  { %v883_v40 = vmul.f32 %v1249_v55, %v858_v36  ;;  %v959_v60 = vsel %vm958_vm7, %v932_v54, %v957_v58 }
 0x42d   :  { %v933_v43 = vadd.f32 %v883_v40, %v857_v39 }
 0x42f   :  { %v934_v45 = vrot.slane %v933_v43, 4 }
 0x431   :  { %v935_v37 = vadd.f32 %v934_v45, %v933_v43 }
 0x433   :  { %v936_v49 = vrot.slane %v935_v37, 2 }
 0x435   :  { %v937_v53 = vadd.f32 %v936_v49, %v935_v37 }
 0x437   :  { %v938_v56 = vrot.slane %v937_v53, 1 }
 0x439   :  { %v939_v55 = vadd.f32 %v938_v56, %v937_v53 }
 0x43b   :  { %v961_v61 = vsel %vm960_vm8, %v939_v55, %v959_v60 }
 0x43c   :  { %967 = vrot.lane.b32.xlu0 %v961_v61, %s1041_s2  ;;  %v964_v62 = vsel %vm963_vm9, %v961_v61, 0.0 }
 0x466   :  { %965 = vadd.xlane.f32.xlu0 %v964_v62 }
 0x4ae   :  { %v968_v63 = vpop.permute.xlu0 %967 }
 0x4af   :  { %v970_v0 = vsel %vm963_vm9, %v968_v63, 0.0 }
 0x4b0   :  { %971 = vadd.xlane.f32.xlu1 %v970_v0 }
 0x4d9   :  { %v966_v1 = vpop.xlane.xlu0 %965 }
 0x4da   :  { %974 = vst.msk [vmem:[%s1301_s3] sm:$0xff] %vm973_vm10, %v966_v1 }
 0x523   :  { %v972_v57 = vpop.xlane.xlu1 %971 }
 0x524   :  { %975 = vst.msk [vmem:[%s1301_s3 + $0x8] sm:$0xff] %vm973_vm10, %v972_v57 }
 0x525   :  { %980 = vsyncpa [#allocation3], 1 }

</bundles_post_ra>
